<compile_context>
chip_gen: v7x
topology: tpu7x:2x2x1
jax: 0.10.0
libtpu: 0.0.40
codegen_flags: <defaults>
</compile_context>

<pallas_src>
import math
from functools import partial

import jax
import jax.numpy as jnp
from jax.experimental import pallas as pl
from jax.experimental.pallas import tpu as pltpu


# ------------------------------- kernel ------------------------------------

def _decoder_kernel(enc_z_ref, mask_ref, q_first_ref, k_ref, v_ref, nodes_ref,
                    wq_ref, bq_ref, wc_ref, bc_ref, probs_ref, *,
                    head_num, qkv_dim, embedding_dim, logit_clipping):
    bt, nq, in_dim = enc_z_ref.shape
    hd = head_num * qkv_dim
    emb = embedding_dim

    inv_sqrt_d = 1.0 / math.sqrt(qkv_dim)
    inv_sqrt_e = 1.0 / math.sqrt(embedding_dim)

    # Mask arrives bf16 (bandwidth); do the add before exp in f32.
    mask = mask_ref[...].astype(jnp.float32)                  # (bt, nq, Np)

    # ---- fused q_last projection: one (bt*nq, emb+lat) @ (emb+lat, hd) ----
    enc_z = enc_z_ref[...].reshape(bt * nq, in_dim)            # bf16
    q_last = (jnp.dot(enc_z, wq_ref[...],
                      preferred_element_type=jnp.float32)
              + bq_ref[...])                                   # (bt*nq, hd) f32
    q = q_first_ref[...].astype(jnp.float32).reshape(bt * nq, hd) + q_last
    q = q.reshape(bt, nq, hd).astype(k_ref.dtype)              # bf16 for MXU

    k_all = k_ref[...]                                         # (bt, Np, hd)
    v_all = v_ref[...]                                         # (bt, Np, hd)

    # ---- multi-head attention; heads = static lane slices of the hd axis ----
    outs = []
    for h in range(head_num):                                  # static unroll
        lo = h * qkv_dim
        qh = q[:, :, lo:lo + qkv_dim]                          # (bt, nq, d)
        kh = k_all[:, :, lo:lo + qkv_dim]                      # (bt, Np, d)
        vh = v_all[:, :, lo:lo + qkv_dim]                      # (bt, Np, d)
        s = jnp.einsum('bqd,bkd->bqk', qh, kh,
                       preferred_element_type=jnp.float32) * inv_sqrt_d
        s = s + mask                                           # rank-3 ninf mask
        s = s - jnp.max(s, axis=-1, keepdims=True)
        p = jnp.exp(s)
        p = p * pl.reciprocal(jnp.sum(p, axis=-1, keepdims=True), approx=True)
        outs.append(jnp.einsum('bqk,bkd->bqd', p.astype(vh.dtype), vh,
                               preferred_element_type=jnp.float32))
    o_cat = jnp.concatenate(outs, axis=-1)                     # (bt, nq, hd) f32

    # ---- fused multi_head_combine: single (bt*nq, hd) @ (hd, emb) ----
    mh = (jnp.dot(o_cat.reshape(bt * nq, hd).astype(wc_ref.dtype), wc_ref[...],
                  preferred_element_type=jnp.float32)
          + bc_ref[...]).reshape(bt, nq, emb)                  # f32

    # ---- single-head score vs encoded nodes, tanh clip, final softmax ----
    nodes = nodes_ref[...]                                     # (bt, Np, emb) bf16
    score = jnp.einsum('bqe,bne->bqn', mh.astype(nodes.dtype), nodes,
                       preferred_element_type=jnp.float32) * inv_sqrt_e
    score = logit_clipping * jnp.tanh(score) + mask
    score = score - jnp.max(score, axis=-1, keepdims=True)
    e = jnp.exp(score)
    # Exact normalization for the final probabilities (feeds a sampler).
    probs_ref[...] = e / jnp.sum(e, axis=-1, keepdims=True)


# ------------------------------ wrapper -------------------------------------

def _round_up(x, m):
    return -(-x // m) * m


def _tile_bytes(sublane, lane, dbytes):
    """Bytes of one (sublane, lane) VMEM tile after (8,128) layout padding."""
    return _round_up(max(sublane, 1), 8) * _round_up(max(lane, 1), 128) * dbytes


def _pad_axis(x, axis, new_size, value=0.0):
    pad = new_size - x.shape[axis]
    if pad <= 0:
        return x
    widths = [(0, 0)] * x.ndim
    widths[axis] = (0, pad)
    return jnp.pad(x, widths, constant_values=value)


def _choose_blocking(B, per_batch_bytes, budget_bytes, max_bt):
    """Pick (bt, n_blocks) so 2*bt*per_batch_bytes <= budget, grid even-ish."""
    bt_cap = max(1, min(budget_bytes // (2 * per_batch_bytes), max_bt))
    if B <= bt_cap:
        if B >= 16 and B % 2 == 0:
            # Split in two so ("parallel",) can feed both v7x TensorCores.
            return B // 2, 2
        return B, 1
    n_blocks = -(-B // bt_cap)
    if n_blocks % 2:
        n_blocks += 1              # even grid -> both TCs busy on v7x
    bt = -(-B // n_blocks)
    return bt, n_blocks


def tsp_decoder_forward(encoded_last, z, ninf_mask, q_first, k, v,
                        encoded_nodes, wq_last, bq_last, wcomb, bcomb, *,
                        head_num, qkv_dim, embedding_dim, logit_clipping,
                        pipeline_budget_bytes=24 * 1024 * 1024,
                        vmem_limit_bytes=48 * 1024 * 1024,
                        max_batch_block=256):
    """forward() of TSP_Decoder_modified.

    encoded_last (B,nq,emb), z (B,nq,lat), ninf_mask (B,nq,N),
    q_first/k/v lane-dense (B,*,H*d), encoded_nodes (B,N,emb);
    wq_last/bq_last, wcomb/bcomb in torch (out,in)/(out,) layout.
    """
    B, nq, emb = encoded_last.shape
    latent = z.shape[-1]
    N = ninf_mask.shape[-1]
    hd = head_num * qkv_dim
    assert emb == embedding_dim
    bf16 = jnp.bfloat16
    NEG = -1e9

    # ---- enc||z fusion: one input stream, one K=(emb+lat) matmul ----------
    enc_z = jnp.concatenate([encoded_last, z], axis=-1).astype(bf16)

    # ---- lane-pad N to a multiple of 128 (lane-dense loads & stores) ------
    Np = _round_up(max(N, 128), 128)
    mask_p = _pad_axis(ninf_mask, 2, Np, NEG).astype(bf16)     # pad cols w/ -1e9
    k_p = _pad_axis(k, 1, Np).astype(bf16)
    v_p = _pad_axis(v, 1, Np).astype(bf16)
    nodes_p = _pad_axis(encoded_nodes, 1, Np).astype(bf16)
    q_first_b = q_first.astype(bf16)

    # ---- weights: torch (out,in) -> (in,out) bf16; biases (1,out) f32 -----
    wq = jnp.asarray(wq_last).T.astype(bf16)                   # (emb+lat, hd)
    bq = jnp.asarray(bq_last).reshape(1, hd).astype(jnp.float32)
    wc = jnp.asarray(wcomb).T.astype(bf16)                     # (hd, emb)
    bc = jnp.asarray(bcomb).reshape(1, emb).astype(jnp.float32)

    # ---- VMEM-budgeted batch block (accounts for (8,128) layout padding) --
    per_batch = (_tile_bytes(nq, emb + latent, 2)              # enc_z
                 + _tile_bytes(nq, Np, 2)                      # mask (bf16)
                 + _tile_bytes(nq, hd, 2)                      # q_first (bf16)
                 + 2 * _tile_bytes(Np, hd, 2)                  # k, v
                 + _tile_bytes(Np, emb, 2)                     # nodes
                 + _tile_bytes(nq, Np, 4))                     # probs out (f32)
    bt, n_blocks = _choose_blocking(B, per_batch, pipeline_budget_bytes,
                                    max_batch_block)
    B_pad = bt * n_blocks

    def pad_b(x):
        return _pad_axis(x, 0, B_pad)

    enc_z, mask_p, q_first_b, k_p, v_p, nodes_p = (
        pad_b(enc_z), pad_b(mask_p), pad_b(q_first_b),
        pad_b(k_p), pad_b(v_p), pad_b(nodes_p))

    def blocked(x):
        nd = x.ndim
        return pl.BlockSpec((bt,) + tuple(x.shape[1:]),
                            lambda b, nd=nd: (b,) + (0,) * (nd - 1))

    def shared(x):
        nd = x.ndim
        return pl.BlockSpec(tuple(x.shape), lambda b, nd=nd: (0,) * nd)

    kernel = partial(_decoder_kernel, head_num=head_num, qkv_dim=qkv_dim,
                     embedding_dim=embedding_dim, logit_clipping=logit_clipping)

    probs = pl.pallas_call(
        kernel,
        out_shape=jax.ShapeDtypeStruct((B_pad, nq, Np), jnp.float32),
        grid_spec=pltpu.PrefetchScalarGridSpec(
            num_scalar_prefetch=0,
            grid=(n_blocks,),
            in_specs=[
                blocked(enc_z),        # (bt, nq, emb+lat)  bf16
                blocked(mask_p),       # (bt, nq, Np)       bf16
                blocked(q_first_b),    # (bt, nq, hd)       bf16
                blocked(k_p),          # (bt, Np, hd)       bf16
                blocked(v_p),          # (bt, Np, hd)       bf16
                blocked(nodes_p),      # (bt, Np, emb)      bf16
                shared(wq),            # (emb+lat, hd)      bf16
                shared(bq),            # (1, hd)            f32
                shared(wc),            # (hd, emb)          bf16
                shared(bc),            # (1, emb)           f32
            ],
            out_specs=pl.BlockSpec((bt, nq, Np), lambda b: (b, 0, 0)),
        ),
        compiler_params=pltpu.CompilerParams(
            dimension_semantics=("parallel",),
            vmem_limit_bytes=vmem_limit_bytes),
    )(enc_z, mask_p, q_first_b, k_p, v_p, nodes_p, wq, bq, wc, bc)

    return probs[:B, :, :N]


# ----------------------------- glue (plain JAX) -----------------------------

def init_linear(key, in_f, out_f):
    """torch.nn.Linear default init: U(-1/sqrt(in), 1/sqrt(in)); W is (out,in)."""
    k1, k2 = jax.random.split(key)
    bound = 1.0 / math.sqrt(in_f)
    w = jax.random.uniform(k1, (out_f, in_f), jnp.float32, -bound, bound)
    b = jax.random.uniform(k2, (out_f,), jnp.float32, -bound, bound)
    return w, b


def _reference_forward(encoded_last, z, ninf_mask, q_first, k, v,
                       encoded_nodes, wq_last, bq_last, wcomb, bcomb, *,
                       head_num, qkv_dim, embedding_dim, logit_clipping):
    """Pure-f32 JAX mirror of the PyTorch forward for validation."""
    B, nq, _ = encoded_last.shape
    d = qkv_dim

    def by_heads(x):
        return x.reshape(B, -1, head_num, d).transpose(0, 2, 1, 3)

    q_last = jnp.concatenate([encoded_last, z], axis=2) @ wq_last.T + bq_last
    qh = by_heads(q_first + q_last)
    kh = by_heads(k)
    vh = by_heads(v)
    s = jnp.einsum('bhqd,bhkd->bhqk', qh, kh) / math.sqrt(d)
    s = s + ninf_mask[:, None, :, :]
    w = jax.nn.softmax(s, axis=-1)
    o = jnp.einsum('bhqk,bhkd->bhqd', w, vh)
    o_cat = o.transpose(0, 2, 1, 3).reshape(B, nq, head_num * d)
    mh = o_cat @ wcomb.T + bcomb
    score = jnp.einsum('bqe,bne->bqn', mh, encoded_nodes) / math.sqrt(embedding_dim)
    score = logit_clipping * jnp.tanh(score) + ninf_mask
    return jax.nn.softmax(score, axis=-1)


if __name__ == "__main__":
    embedding_dim = 32
    head_num = 4
    qkv_dim = 8
    latent_dim = 8
    logit_clipping = 10.0
    B, nq, N = 2, 8, 16   # batch, query count, number of nodes
    hd = head_num * qkv_dim

    key = jax.random.PRNGKey(0)
    keys = jax.random.split(key, 12)
    wq_first, bq_first = init_linear(keys[0], embedding_dim + latent_dim, hd)
    wq_last, bq_last = init_linear(keys[1], embedding_dim + latent_dim, hd)
    wk, bk = init_linear(keys[2], embedding_dim, hd)
    wv, bv = init_linear(keys[3], embedding_dim, hd)
    wcomb, bcomb = init_linear(keys[4], hd, embedding_dim)

    encoded_nodes = jax.random.normal(keys[5], (B, N, embedding_dim), jnp.float32)
    encoded_q1 = jax.random.normal(keys[6], (B, nq, embedding_dim), jnp.float32)
    z1 = jax.random.normal(keys[7], (B, nq, latent_dim), jnp.float32)
    encoded_last = jax.random.normal(keys[8], (B, nq, embedding_dim), jnp.float32)
    z = jax.random.normal(keys[9], (B, nq, latent_dim), jnp.float32)
    mask_bits = jax.random.bernoulli(keys[10], 0.3, (B, nq, N))
    ninf_mask = jnp.where(mask_bits, -1e9, 0.0).astype(jnp.float32)

    # set_kv(encoded_nodes): lane-dense (B, N, H*d); single_head_key kept as
    # encoded_nodes itself (contracted over emb in-kernel, same semantics).
    k_state = encoded_nodes @ wk.T + bk                       # (B, N, H*d)
    v_state = encoded_nodes @ wv.T + bv                       # (B, N, H*d)

    # set_q1(encoded_q1, z1): lane-dense (B, nq, H*d)
    q_first = jnp.concatenate([encoded_q1, z1], axis=2) @ wq_first.T + bq_first

    probs = tsp_decoder_forward(
        encoded_last, z, ninf_mask, q_first, k_state, v_state, encoded_nodes,
        wq_last, bq_last, wcomb, bcomb,
        head_num=head_num, qkv_dim=qkv_dim, embedding_dim=embedding_dim,
        logit_clipping=logit_clipping)
    jax.block_until_ready(probs)

    ref = _reference_forward(
        encoded_last, z, ninf_mask, q_first, k_state, v_state, encoded_nodes,
        wq_last, bq_last, wcomb, bcomb,
        head_num=head_num, qkv_dim=qkv_dim, embedding_dim=embedding_dim,
        logit_clipping=logit_clipping)

    assert probs.shape == (B, nq, N)
    assert bool(jnp.all(jnp.isfinite(probs)))
    assert bool(jnp.all(jnp.abs(jnp.sum(probs, axis=-1) - 1.0) < 2e-3))
    assert bool(jnp.max(jnp.abs(probs - jnp.asarray(ref))) < 5e-2)
    print("KERNEL_OK")
</pallas_src>

<mosaic_0001>
module attributes {stable_mosaic.version = 11 : i64} {
  func.func @_decoder_kernel(%arg0: i32, %arg1: memref<2x8x40xbf16, #tpu.memory_space<vmem>>, %arg2: memref<2x8x128xbf16, #tpu.memory_space<vmem>>, %arg3: memref<2x8x32xbf16, #tpu.memory_space<vmem>>, %arg4: memref<2x128x32xbf16, #tpu.memory_space<vmem>>, %arg5: memref<2x128x32xbf16, #tpu.memory_space<vmem>>, %arg6: memref<2x128x32xbf16, #tpu.memory_space<vmem>>, %arg7: memref<40x32xbf16, #tpu.memory_space<vmem>>, %arg8: memref<1x32xf32, #tpu.memory_space<vmem>>, %arg9: memref<32x32xbf16, #tpu.memory_space<vmem>>, %arg10: memref<1x32xf32, #tpu.memory_space<vmem>>, %arg11: memref<2x8x128xf32, #tpu.memory_space<vmem>>) attributes {dimension_semantics = [#tpu.dimension_semantics<parallel>], iteration_bounds = array<i64: 1>, scalar_prefetch = 0 : i64, scratch_operands = 0 : i64, tpu.core_type = #tpu.core_type<tc>, window_params = [{transform_indices = @transform_0, window_bounds = array<i64: 2, 8, 40>}, {transform_indices = @transform_1, window_bounds = array<i64: 2, 8, 128>}, {transform_indices = @transform_2, window_bounds = array<i64: 2, 8, 32>}, {transform_indices = @transform_3, window_bounds = array<i64: 2, 128, 32>}, {transform_indices = @transform_4, window_bounds = array<i64: 2, 128, 32>}, {transform_indices = @transform_5, window_bounds = array<i64: 2, 128, 32>}, {pipeline_mode = #tpu.pipeline_mode<synchronous>, transform_indices = @transform_6, window_bounds = array<i64: 40, 32>}, {pipeline_mode = #tpu.pipeline_mode<synchronous>, transform_indices = @transform_7, window_bounds = array<i64: 1, 32>}, {pipeline_mode = #tpu.pipeline_mode<synchronous>, transform_indices = @transform_8, window_bounds = array<i64: 32, 32>}, {pipeline_mode = #tpu.pipeline_mode<synchronous>, transform_indices = @transform_9, window_bounds = array<i64: 1, 32>}, {transform_indices = @transform_10, window_bounds = array<i64: 2, 8, 128>}]} {
    %c0 = arith.constant 0 : index
    %c0_0 = arith.constant 0 : index
    %c0_1 = arith.constant 0 : index
    %0 = vector.load %arg2[%c0, %c0_0, %c0_1] : memref<2x8x128xbf16, #tpu.memory_space<vmem>>, vector<2x8x128xbf16>
    %1 = arith.extf %0 : vector<2x8x128xbf16> to vector<2x8x128xf32>
    %c0_2 = arith.constant 0 : index
    %c0_3 = arith.constant 0 : index
    %c0_4 = arith.constant 0 : index
    %2 = vector.load %arg1[%c0_2, %c0_3, %c0_4] : memref<2x8x40xbf16, #tpu.memory_space<vmem>>, vector<2x8x40xbf16>
    %3 = vector.shape_cast %2 : vector<2x8x40xbf16> to vector<16x40xbf16>
    %c0_5 = arith.constant 0 : index
    %c0_6 = arith.constant 0 : index
    %4 = vector.load %arg7[%c0_5, %c0_6] : memref<40x32xbf16, #tpu.memory_space<vmem>>, vector<40x32xbf16>
    %cst = arith.constant dense<0.000000e+00> : vector<16x32xf32>
    %5 = tpu.matmul %3, %4, %cst {dimension_numbers = #tpu.dot_dimension_numbers<[1], [0], [0], [1], [0, 0, 1, 1], [], []>} : vector<16x40xbf16>, vector<40x32xbf16>, vector<16x32xf32> -> vector<16x32xf32>
    %c0_7 = arith.constant 0 : index
    %c0_8 = arith.constant 0 : index
    %6 = vector.load %arg8[%c0_7, %c0_8] : memref<1x32xf32, #tpu.memory_space<vmem>>, vector<1x32xf32>
    %7 = vector.broadcast %6 : vector<1x32xf32> to vector<16x32xf32>
    %8 = arith.addf %5, %7 : vector<16x32xf32>
    %c0_9 = arith.constant 0 : index
    %c0_10 = arith.constant 0 : index
    %c0_11 = arith.constant 0 : index
    %9 = vector.load %arg3[%c0_9, %c0_10, %c0_11] : memref<2x8x32xbf16, #tpu.memory_space<vmem>>, vector<2x8x32xbf16>
    %10 = arith.extf %9 : vector<2x8x32xbf16> to vector<2x8x32xf32>
    %11 = vector.shape_cast %10 : vector<2x8x32xf32> to vector<16x32xf32>
    %12 = arith.addf %11, %8 : vector<16x32xf32>
    %13 = vector.shape_cast %12 : vector<16x32xf32> to vector<2x8x32xf32>
    %14 = arith.truncf %13 : vector<2x8x32xf32> to vector<2x8x32xbf16>
    %c0_12 = arith.constant 0 : index
    %c0_13 = arith.constant 0 : index
    %c0_14 = arith.constant 0 : index
    %15 = vector.load %arg4[%c0_12, %c0_13, %c0_14] : memref<2x128x32xbf16, #tpu.memory_space<vmem>>, vector<2x128x32xbf16>
    %c0_15 = arith.constant 0 : index
    %c0_16 = arith.constant 0 : index
    %c0_17 = arith.constant 0 : index
    %16 = vector.load %arg5[%c0_15, %c0_16, %c0_17] : memref<2x128x32xbf16, #tpu.memory_space<vmem>>, vector<2x128x32xbf16>
    %17 = vector.extract_strided_slice %14 {offsets = [0, 0, 0], sizes = [2, 8, 8], strides = [1, 1, 1]} : vector<2x8x32xbf16> to vector<2x8x8xbf16>
    %18 = vector.extract_strided_slice %15 {offsets = [0, 0, 0], sizes = [2, 128, 8], strides = [1, 1, 1]} : vector<2x128x32xbf16> to vector<2x128x8xbf16>
    %19 = vector.extract_strided_slice %16 {offsets = [0, 0, 0], sizes = [2, 128, 8], strides = [1, 1, 1]} : vector<2x128x32xbf16> to vector<2x128x8xbf16>
    "tpu.trace_start"() <{level = 10 : i32, message = "bqd,bkd->bqk"}> : () -> ()
    %cst_18 = arith.constant dense<0.000000e+00> : vector<2x8x128xf32>
    %20 = tpu.matmul %17, %18, %cst_18 {dimension_numbers = #tpu.dot_dimension_numbers<[2], [2], [1], [1], [0, 0, 0, 1, 1, 1], [0], [0]>} : vector<2x8x8xbf16>, vector<2x128x8xbf16>, vector<2x8x128xf32> -> vector<2x8x128xf32>
    "tpu.trace_stop"() : () -> ()
    %cst_19 = arith.constant 0.353553385 : f32
    %21 = vector.broadcast %cst_19 : f32 to vector<2x8x128xf32>
    %22 = arith.mulf %20, %21 : vector<2x8x128xf32>
    %23 = arith.addf %22, %1 : vector<2x8x128xf32>
    %cst_20 = arith.constant dense<0xFF800000> : vector<2x8xf32>
    %24 = vector.multi_reduction <maximumf>, %23, %cst_20 [2] : vector<2x8x128xf32> to vector<2x8xf32>
    %25 = vector.shape_cast %24 : vector<2x8xf32> to vector<2x8x1xf32>
    %26 = vector.broadcast %25 : vector<2x8x1xf32> to vector<2x8x128xf32>
    %27 = arith.subf %23, %26 : vector<2x8x128xf32>
    %28 = math.exp %27 : vector<2x8x128xf32>
    %cst_21 = arith.constant dense<0.000000e+00> : vector<2x8xf32>
    %29 = vector.multi_reduction <add>, %28, %cst_21 [2] : vector<2x8x128xf32> to vector<2x8xf32>
    %30 = vector.shape_cast %29 : vector<2x8xf32> to vector<2x8x1xf32>
    %31 = tpu.reciprocal %30 {approx = true} : vector<2x8x1xf32> -> vector<2x8x1xf32>
    %32 = vector.broadcast %31 : vector<2x8x1xf32> to vector<2x8x128xf32>
    %33 = arith.mulf %28, %32 : vector<2x8x128xf32>
    %34 = arith.truncf %33 : vector<2x8x128xf32> to vector<2x8x128xbf16>
    "tpu.trace_start"() <{level = 10 : i32, message = "bqk,bkd->bqd"}> : () -> ()
    %cst_22 = arith.constant dense<0.000000e+00> : vector<2x8x8xf32>
    %35 = tpu.matmul %34, %19, %cst_22 {dimension_numbers = #tpu.dot_dimension_numbers<[2], [1], [1], [2], [0, 0, 0, 1, 1, 2], [0], [0]>} : vector<2x8x128xbf16>, vector<2x128x8xbf16>, vector<2x8x8xf32> -> vector<2x8x8xf32>
    "tpu.trace_stop"() : () -> ()
    %36 = vector.extract_strided_slice %14 {offsets = [0, 0, 8], sizes = [2, 8, 8], strides = [1, 1, 1]} : vector<2x8x32xbf16> to vector<2x8x8xbf16>
    %37 = vector.extract_strided_slice %15 {offsets = [0, 0, 8], sizes = [2, 128, 8], strides = [1, 1, 1]} : vector<2x128x32xbf16> to vector<2x128x8xbf16>
    %38 = vector.extract_strided_slice %16 {offsets = [0, 0, 8], sizes = [2, 128, 8], strides = [1, 1, 1]} : vector<2x128x32xbf16> to vector<2x128x8xbf16>
    "tpu.trace_start"() <{level = 10 : i32, message = "bqd,bkd->bqk"}> : () -> ()
    %cst_23 = arith.constant dense<0.000000e+00> : vector<2x8x128xf32>
    %39 = tpu.matmul %36, %37, %cst_23 {dimension_numbers = #tpu.dot_dimension_numbers<[2], [2], [1], [1], [0, 0, 0, 1, 1, 1], [0], [0]>} : vector<2x8x8xbf16>, vector<2x128x8xbf16>, vector<2x8x128xf32> -> vector<2x8x128xf32>
    "tpu.trace_stop"() : () -> ()
    %cst_24 = arith.constant 0.353553385 : f32
    %40 = vector.broadcast %cst_24 : f32 to vector<2x8x128xf32>
    %41 = arith.mulf %39, %40 : vector<2x8x128xf32>
    %42 = arith.addf %41, %1 : vector<2x8x128xf32>
    %cst_25 = arith.constant dense<0xFF800000> : vector<2x8xf32>
    %43 = vector.multi_reduction <maximumf>, %42, %cst_25 [2] : vector<2x8x128xf32> to vector<2x8xf32>
    %44 = vector.shape_cast %43 : vector<2x8xf32> to vector<2x8x1xf32>
    %45 = vector.broadcast %44 : vector<2x8x1xf32> to vector<2x8x128xf32>
    %46 = arith.subf %42, %45 : vector<2x8x128xf32>
    %47 = math.exp %46 : vector<2x8x128xf32>
    %cst_26 = arith.constant dense<0.000000e+00> : vector<2x8xf32>
    %48 = vector.multi_reduction <add>, %47, %cst_26 [2] : vector<2x8x128xf32> to vector<2x8xf32>
    %49 = vector.shape_cast %48 : vector<2x8xf32> to vector<2x8x1xf32>
    %50 = tpu.reciprocal %49 {approx = true} : vector<2x8x1xf32> -> vector<2x8x1xf32>
    %51 = vector.broadcast %50 : vector<2x8x1xf32> to vector<2x8x128xf32>
    %52 = arith.mulf %47, %51 : vector<2x8x128xf32>
    %53 = arith.truncf %52 : vector<2x8x128xf32> to vector<2x8x128xbf16>
    "tpu.trace_start"() <{level = 10 : i32, message = "bqk,bkd->bqd"}> : () -> ()
    %cst_27 = arith.constant dense<0.000000e+00> : vector<2x8x8xf32>
    %54 = tpu.matmul %53, %38, %cst_27 {dimension_numbers = #tpu.dot_dimension_numbers<[2], [1], [1], [2], [0, 0, 0, 1, 1, 2], [0], [0]>} : vector<2x8x128xbf16>, vector<2x128x8xbf16>, vector<2x8x8xf32> -> vector<2x8x8xf32>
    "tpu.trace_stop"() : () -> ()
    %55 = vector.extract_strided_slice %14 {offsets = [0, 0, 16], sizes = [2, 8, 8], strides = [1, 1, 1]} : vector<2x8x32xbf16> to vector<2x8x8xbf16>
    %56 = vector.extract_strided_slice %15 {offsets = [0, 0, 16], sizes = [2, 128, 8], strides = [1, 1, 1]} : vector<2x128x32xbf16> to vector<2x128x8xbf16>
    %57 = vector.extract_strided_slice %16 {offsets = [0, 0, 16], sizes = [2, 128, 8], strides = [1, 1, 1]} : vector<2x128x32xbf16> to vector<2x128x8xbf16>
    "tpu.trace_start"() <{level = 10 : i32, message = "bqd,bkd->bqk"}> : () -> ()
    %cst_28 = arith.constant dense<0.000000e+00> : vector<2x8x128xf32>
    %58 = tpu.matmul %55, %56, %cst_28 {dimension_numbers = #tpu.dot_dimension_numbers<[2], [2], [1], [1], [0, 0, 0, 1, 1, 1], [0], [0]>} : vector<2x8x8xbf16>, vector<2x128x8xbf16>, vector<2x8x128xf32> -> vector<2x8x128xf32>
    "tpu.trace_stop"() : () -> ()
    %cst_29 = arith.constant 0.353553385 : f32
    %59 = vector.broadcast %cst_29 : f32 to vector<2x8x128xf32>
    %60 = arith.mulf %58, %59 : vector<2x8x128xf32>
    %61 = arith.addf %60, %1 : vector<2x8x128xf32>
    %cst_30 = arith.constant dense<0xFF800000> : vector<2x8xf32>
    %62 = vector.multi_reduction <maximumf>, %61, %cst_30 [2] : vector<2x8x128xf32> to vector<2x8xf32>
    %63 = vector.shape_cast %62 : vector<2x8xf32> to vector<2x8x1xf32>
    %64 = vector.broadcast %63 : vector<2x8x1xf32> to vector<2x8x128xf32>
    %65 = arith.subf %61, %64 : vector<2x8x128xf32>
    %66 = math.exp %65 : vector<2x8x128xf32>
    %cst_31 = arith.constant dense<0.000000e+00> : vector<2x8xf32>
    %67 = vector.multi_reduction <add>, %66, %cst_31 [2] : vector<2x8x128xf32> to vector<2x8xf32>
    %68 = vector.shape_cast %67 : vector<2x8xf32> to vector<2x8x1xf32>
    %69 = tpu.reciprocal %68 {approx = true} : vector<2x8x1xf32> -> vector<2x8x1xf32>
    %70 = vector.broadcast %69 : vector<2x8x1xf32> to vector<2x8x128xf32>
    %71 = arith.mulf %66, %70 : vector<2x8x128xf32>
    %72 = arith.truncf %71 : vector<2x8x128xf32> to vector<2x8x128xbf16>
    "tpu.trace_start"() <{level = 10 : i32, message = "bqk,bkd->bqd"}> : () -> ()
    %cst_32 = arith.constant dense<0.000000e+00> : vector<2x8x8xf32>
    %73 = tpu.matmul %72, %57, %cst_32 {dimension_numbers = #tpu.dot_dimension_numbers<[2], [1], [1], [2], [0, 0, 0, 1, 1, 2], [0], [0]>} : vector<2x8x128xbf16>, vector<2x128x8xbf16>, vector<2x8x8xf32> -> vector<2x8x8xf32>
    "tpu.trace_stop"() : () -> ()
    %74 = vector.extract_strided_slice %14 {offsets = [0, 0, 24], sizes = [2, 8, 8], strides = [1, 1, 1]} : vector<2x8x32xbf16> to vector<2x8x8xbf16>
    %75 = vector.extract_strided_slice %15 {offsets = [0, 0, 24], sizes = [2, 128, 8], strides = [1, 1, 1]} : vector<2x128x32xbf16> to vector<2x128x8xbf16>
    %76 = vector.extract_strided_slice %16 {offsets = [0, 0, 24], sizes = [2, 128, 8], strides = [1, 1, 1]} : vector<2x128x32xbf16> to vector<2x128x8xbf16>
    "tpu.trace_start"() <{level = 10 : i32, message = "bqd,bkd->bqk"}> : () -> ()
    %cst_33 = arith.constant dense<0.000000e+00> : vector<2x8x128xf32>
    %77 = tpu.matmul %74, %75, %cst_33 {dimension_numbers = #tpu.dot_dimension_numbers<[2], [2], [1], [1], [0, 0, 0, 1, 1, 1], [0], [0]>} : vector<2x8x8xbf16>, vector<2x128x8xbf16>, vector<2x8x128xf32> -> vector<2x8x128xf32>
    "tpu.trace_stop"() : () -> ()
    %cst_34 = arith.constant 0.353553385 : f32
    %78 = vector.broadcast %cst_34 : f32 to vector<2x8x128xf32>
    %79 = arith.mulf %77, %78 : vector<2x8x128xf32>
    %80 = arith.addf %79, %1 : vector<2x8x128xf32>
    %cst_35 = arith.constant dense<0xFF800000> : vector<2x8xf32>
    %81 = vector.multi_reduction <maximumf>, %80, %cst_35 [2] : vector<2x8x128xf32> to vector<2x8xf32>
    %82 = vector.shape_cast %81 : vector<2x8xf32> to vector<2x8x1xf32>
    %83 = vector.broadcast %82 : vector<2x8x1xf32> to vector<2x8x128xf32>
    %84 = arith.subf %80, %83 : vector<2x8x128xf32>
    %85 = math.exp %84 : vector<2x8x128xf32>
    %cst_36 = arith.constant dense<0.000000e+00> : vector<2x8xf32>
    %86 = vector.multi_reduction <add>, %85, %cst_36 [2] : vector<2x8x128xf32> to vector<2x8xf32>
    %87 = vector.shape_cast %86 : vector<2x8xf32> to vector<2x8x1xf32>
    %88 = tpu.reciprocal %87 {approx = true} : vector<2x8x1xf32> -> vector<2x8x1xf32>
    %89 = vector.broadcast %88 : vector<2x8x1xf32> to vector<2x8x128xf32>
    %90 = arith.mulf %85, %89 : vector<2x8x128xf32>
    %91 = arith.truncf %90 : vector<2x8x128xf32> to vector<2x8x128xbf16>
    "tpu.trace_start"() <{level = 10 : i32, message = "bqk,bkd->bqd"}> : () -> ()
    %cst_37 = arith.constant dense<0.000000e+00> : vector<2x8x8xf32>
    %92 = tpu.matmul %91, %76, %cst_37 {dimension_numbers = #tpu.dot_dimension_numbers<[2], [1], [1], [2], [0, 0, 0, 1, 1, 2], [0], [0]>} : vector<2x8x128xbf16>, vector<2x128x8xbf16>, vector<2x8x8xf32> -> vector<2x8x8xf32>
    "tpu.trace_stop"() : () -> ()
    %93 = tpu.concatenate %35, %54, %73, %92 in 2 : vector<2x8x8xf32>, vector<2x8x8xf32>, vector<2x8x8xf32>, vector<2x8x8xf32> -> vector<2x8x32xf32>
    %94 = vector.shape_cast %93 : vector<2x8x32xf32> to vector<16x32xf32>
    %95 = arith.truncf %94 : vector<16x32xf32> to vector<16x32xbf16>
    %c0_38 = arith.constant 0 : index
    %c0_39 = arith.constant 0 : index
    %96 = vector.load %arg9[%c0_38, %c0_39] : memref<32x32xbf16, #tpu.memory_space<vmem>>, vector<32x32xbf16>
    %cst_40 = arith.constant dense<0.000000e+00> : vector<16x32xf32>
    %97 = tpu.matmul %95, %96, %cst_40 {dimension_numbers = #tpu.dot_dimension_numbers<[1], [0], [0], [1], [0, 0, 1, 1], [], []>} : vector<16x32xbf16>, vector<32x32xbf16>, vector<16x32xf32> -> vector<16x32xf32>
    %c0_41 = arith.constant 0 : index
    %c0_42 = arith.constant 0 : index
    %98 = vector.load %arg10[%c0_41, %c0_42] : memref<1x32xf32, #tpu.memory_space<vmem>>, vector<1x32xf32>
    %99 = vector.broadcast %98 : vector<1x32xf32> to vector<16x32xf32>
    %100 = arith.addf %97, %99 : vector<16x32xf32>
    %101 = vector.shape_cast %100 : vector<16x32xf32> to vector<2x8x32xf32>
    %c0_43 = arith.constant 0 : index
    %c0_44 = arith.constant 0 : index
    %c0_45 = arith.constant 0 : index
    %102 = vector.load %arg6[%c0_43, %c0_44, %c0_45] : memref<2x128x32xbf16, #tpu.memory_space<vmem>>, vector<2x128x32xbf16>
    %103 = arith.truncf %101 : vector<2x8x32xf32> to vector<2x8x32xbf16>
    "tpu.trace_start"() <{level = 10 : i32, message = "bqe,bne->bqn"}> : () -> ()
    %cst_46 = arith.constant dense<0.000000e+00> : vector<2x8x128xf32>
    %104 = tpu.matmul %103, %102, %cst_46 {dimension_numbers = #tpu.dot_dimension_numbers<[2], [2], [1], [1], [0, 0, 0, 1, 1, 1], [0], [0]>} : vector<2x8x32xbf16>, vector<2x128x32xbf16>, vector<2x8x128xf32> -> vector<2x8x128xf32>
    "tpu.trace_stop"() : () -> ()
    %cst_47 = arith.constant 0.176776692 : f32
    %105 = vector.broadcast %cst_47 : f32 to vector<2x8x128xf32>
    %106 = arith.mulf %104, %105 : vector<2x8x128xf32>
    %107 = math.tanh %106 : vector<2x8x128xf32>
    %cst_48 = arith.constant 1.000000e+01 : f32
    %108 = vector.broadcast %cst_48 : f32 to vector<2x8x128xf32>
    %109 = arith.mulf %108, %107 : vector<2x8x128xf32>
    %110 = arith.addf %109, %1 : vector<2x8x128xf32>
    %cst_49 = arith.constant dense<0xFF800000> : vector<2x8xf32>
    %111 = vector.multi_reduction <maximumf>, %110, %cst_49 [2] : vector<2x8x128xf32> to vector<2x8xf32>
    %112 = vector.shape_cast %111 : vector<2x8xf32> to vector<2x8x1xf32>
    %113 = vector.broadcast %112 : vector<2x8x1xf32> to vector<2x8x128xf32>
    %114 = arith.subf %110, %113 : vector<2x8x128xf32>
    %115 = math.exp %114 : vector<2x8x128xf32>
    %cst_50 = arith.constant dense<0.000000e+00> : vector<2x8xf32>
    %116 = vector.multi_reduction <add>, %115, %cst_50 [2] : vector<2x8x128xf32> to vector<2x8xf32>
    %117 = vector.shape_cast %116 : vector<2x8xf32> to vector<2x8x1xf32>
    %118 = vector.broadcast %117 : vector<2x8x1xf32> to vector<2x8x128xf32>
    %119 = arith.divf %115, %118 : vector<2x8x128xf32>
    %c0_51 = arith.constant 0 : index
    %c0_52 = arith.constant 0 : index
    %c0_53 = arith.constant 0 : index
    %120 = vector.load %arg11[%c0_51, %c0_52, %c0_53] : memref<2x8x128xf32, #tpu.memory_space<vmem>>, vector<2x8x128xf32>
    tpu.vector_store %arg11[%c0_51, %c0_52, %c0_53], %119 {strides = array<i32>} : memref<2x8x128xf32, #tpu.memory_space<vmem>>, vector<2x8x128xf32>,
    return
  }
  func.func @transform_0(%arg0: i32) -> (i32, i32, i32) {
    %c0_i32 = arith.constant 0 : i32
    %c0_i32_0 = arith.constant 0 : i32
    %c0_i32_1 = arith.constant 0 : i32
    return %arg0, %c0_i32, %c0_i32_0 : i32, i32, i32
  }
  func.func @transform_1(%arg0: i32) -> (i32, i32, i32) {
    %c0_i32 = arith.constant 0 : i32
    %c0_i32_0 = arith.constant 0 : i32
    %c0_i32_1 = arith.constant 0 : i32
    return %arg0, %c0_i32, %c0_i32_0 : i32, i32, i32
  }
  func.func @transform_2(%arg0: i32) -> (i32, i32, i32) {
    %c0_i32 = arith.constant 0 : i32
    %c0_i32_0 = arith.constant 0 : i32
    %c0_i32_1 = arith.constant 0 : i32
    return %arg0, %c0_i32, %c0_i32_0 : i32, i32, i32
  }
  func.func @transform_3(%arg0: i32) -> (i32, i32, i32) {
    %c0_i32 = arith.constant 0 : i32
    %c0_i32_0 = arith.constant 0 : i32
    %c0_i32_1 = arith.constant 0 : i32
    return %arg0, %c0_i32, %c0_i32_0 : i32, i32, i32
  }
  func.func @transform_4(%arg0: i32) -> (i32, i32, i32) {
    %c0_i32 = arith.constant 0 : i32
    %c0_i32_0 = arith.constant 0 : i32
    %c0_i32_1 = arith.constant 0 : i32
    return %arg0, %c0_i32, %c0_i32_0 : i32, i32, i32
  }
  func.func @transform_5(%arg0: i32) -> (i32, i32, i32) {
    %c0_i32 = arith.constant 0 : i32
    %c0_i32_0 = arith.constant 0 : i32
    %c0_i32_1 = arith.constant 0 : i32
    return %arg0, %c0_i32, %c0_i32_0 : i32, i32, i32
  }
  func.func @transform_6(%arg0: i32) -> (i32, i32) {
    %c0_i32 = arith.constant 0 : i32
    %c0_i32_0 = arith.constant 0 : i32
    %c0_i32_1 = arith.constant 0 : i32
    return %c0_i32, %c0_i32_0 : i32, i32
  }
  func.func @transform_7(%arg0: i32) -> (i32, i32) {
    %c0_i32 = arith.constant 0 : i32
    %c0_i32_0 = arith.constant 0 : i32
    %c0_i32_1 = arith.constant 0 : i32
    return %c0_i32, %c0_i32_0 : i32, i32
  }
  func.func @transform_8(%arg0: i32) -> (i32, i32) {
    %c0_i32 = arith.constant 0 : i32
    %c0_i32_0 = arith.constant 0 : i32
    %c0_i32_1 = arith.constant 0 : i32
    return %c0_i32, %c0_i32_0 : i32, i32
  }
  func.func @transform_9(%arg0: i32) -> (i32, i32) {
    %c0_i32 = arith.constant 0 : i32
    %c0_i32_0 = arith.constant 0 : i32
    %c0_i32_1 = arith.constant 0 : i32
    return %c0_i32, %c0_i32_0 : i32, i32
  }
  func.func @transform_10(%arg0: i32) -> (i32, i32, i32) {
    %c0_i32 = arith.constant 0 : i32
    %c0_i32_0 = arith.constant 0 : i32
    %c0_i32_1 = arith.constant 0 : i32
    return %arg0, %c0_i32, %c0_i32_0 : i32, i32, i32
  }
}

</mosaic_0001>

<bundles_post_ra>
// kernel: tpu_custom_call.1
= control target key start
LH: loop header
LB: loop body
LE: loop exit
PB: predicated region body
PF: predicated region fallthrough
CT: control target
= control target key end

     0   :  { %v2774_v1 = vmov 0.0   ;;  %vm2775_vm0 = vmmov 0   ;;  %vm79_vm1 = vcmask 1043456   ;;  %vm236_vm2 = vcmask 64512   ;;  %s3725_s0 = inlined_call_operand.vmem [shape: bf16[2,8,40], index: 0, kind: input, shape index: {}]   ;;  %s3726_s1 = inlined_call_operand.vmem [shape: bf16[2,8,128], index: 1, kind: input, shape index: {}]   ;;  %s3727_s2 = inlined_call_operand.vmem [shape: bf16[2,8,32], index: 2, kind: input, shape index: {}]   ;;  %s3728_s3 = inlined_call_operand.vmem [shape: bf16[2,128,32], index: 3, kind: input, shape index: {}]   ;;  %s3729_s4 = inlined_call_operand.vmem [shape: bf16[2,128,32], index: 4, kind: input, shape index: {}]   ;;  %s3730_s5 = inlined_call_operand.vmem [shape: bf16[2,128,32], index: 5, kind: input, shape index: {}]   ;;  %s3731_s6 = inlined_call_operand.vmem [shape: bf16[40,32], index: 6, kind: input, shape index: {}]   ;;  %s3732_s7 = inlined_call_operand.vmem [shape: f32[1,32], index: 7, kind: input, shape index: {}]   ;;  %s3733_s8 = inlined_call_operand.vmem [shape: bf16[32,32], index: 8, kind: input, shape index: {}]   ;;  %s3734_s9 = inlined_call_operand.vmem [shape: f32[1,32], index: 9, kind: input, shape index: {}]   ;;  %s3735_s10 = inlined_call_operand.hbm [shape: f32[2,8,128], index: 10, kind: output, shape index: {}]  }
   0x1   :  { %v2620_v0 = vld [vmem:[%s3731_s6] sm:$0xff]   ;;  %2217 = vmatprep.subr.bf16.mxu0 %v2774_v1  ;;  %2227 = vmatprep.subr.bf16.mxu1 %v2774_v1  ;;  %v2621_v2 = vld [vmem:[%s3731_s6 + $0x8] sm:$0xff]   ;;  %v2622_v3 = vld [vmem:[%s3731_s6 + $0x10] ss:$0 sps:$4 sm:$0xff]   ;;  %vm75_vm3 = vcmask 326656  }
   0x2   :  { %2218 = vmatpush3.bf16.msra.mxu0 %v2620_v0  ;;  %2223 = vmatprep.mubr.msk.bf16.mxu0 %vm2775_vm0, %v2774_v1  ;;  %v2856_v4 = vld [vmem:[%s3728_s3] sm:$0xff]   ;;  %v81_v6 = vsel %vm79_vm1, %v2622_v3, 0  ;;  %v2867_v7 = vld [vmem:[%s3728_s3 + $0x8] sm:$0xff]   ;;  %v2888_v12 = vld [vmem:[%s3728_s3 + $0x10] sm:$0xff]  }
   0x3   :  { %2219 = vmatprep.subr.bf16.mxu0 %v2774_v1  ;;  %2243 = vmatprep.mubr.msk.bf16.mxu1 %vm2775_vm0, %v2774_v1  ;;  %v241_v5 = vsel %vm236_vm2, %v2856_v4, 0  ;;  %v2623_v8 = vld [vmem:[%s3725_s0] sm:$0xff]   ;;  %v244_v10 = vsel %vm236_vm2, %v2867_v7, 0  ;;  %v2883_v11 = vld [vmem:[%s3728_s3 + $0x48] sm:$0xff]   ;;  %v2893_v13 = vld [vmem:[%s3728_s3 + $0x50] sm:$0xff]   ;;  %v247_v19 = vsel %vm236_vm2, %v2888_v12, 0 }
   0x4   :  { %2228 = vmatpush3.bf16.xpose.msra.mxu1 %v241_v5  ;;  %v2876_v9 = vld [vmem:[%s3728_s3 + $0x40] sm:$0xff]   ;;  %v2898_v14 = vld [vmem:[%s3728_s3 + $0x18] sm:$0xff]   ;;  %v351_v18 = vsel %vm236_vm2, %v2883_v11, 0  ;;  %v354_v20 = vsel %vm236_vm2, %v2893_v13, 0  ;;  %v2935_v24 = vld [vmem:[%s3728_s3 + $0x28] sm:$0xff]  }
   0x5   :  { %2229 = vmatprep.subr.bf16.mxu1 %v2774_v1  ;;  %v2903_v15 = vld [vmem:[%s3728_s3 + $0x58] sm:$0xff]   ;;  %v2911_v16 = vld [vmem:[%s3728_s3 + $0x20] sm:$0xff]   ;;  %v348_v17 = vsel %vm236_vm2, %v2876_v9, 0  ;;  %v250_v21 = vsel %vm236_vm2, %v2898_v14, 0  ;;  %v256_v25 = vsel %vm236_vm2, %v2935_v24, 0 }
   0x6   :  { %2220 = vmatpush3.bf16.msra.mxu0 %v2621_v2  ;;  %v357_v22 = vsel %vm236_vm2, %v2903_v15, 0  ;;  %v253_v23 = vsel %vm236_vm2, %v2911_v16, 0 }
   0x7   :  { %2221 = vmatprep.subr.bf16.mxu0 %v2774_v1 }
   0xa   :  { %2222 = vmatpush3.bf16.msra.mxu0 %v81_v6 }
   0xb   :  { %2247 = vmatprep.subr.bf16.mxu0 %v2774_v1 }
   0xc   :  { %2230 = vmatpush3.bf16.xpose.msra.mxu1 %v244_v10 }
   0xd   :  { %2224 = vmatmul.mubr.msk.bf16.vlgmr.msra.gmra.mrb[0].mxu0 %vm75_vm3, %v2623_v8  ;;  %2231 = vmatprep.subr.bf16.mxu1 %v2774_v1 }
   0xe   :  { %2263 = vmatprep.mubr.msk.bf16.mxu0 %vm2775_vm0, %v2774_v1 }
  0x13   :  { %2248 = vmatpush3.bf16.xpose.msra.mxu0 %v348_v17 }
  0x14   :  { %2249 = vmatprep.subr.bf16.mxu0 %v2774_v1  ;;  %2232 = vmatpush3.bf16.xpose.msra.mxu1 %v247_v19 }
  0x15   :  { %2233 = vmatprep.subr.bf16.mxu1 %v2774_v1 }
  0x1b   :  { %2250 = vmatpush3.bf16.xpose.msra.mxu0 %v351_v18 }
  0x1c   :  { %2251 = vmatprep.subr.bf16.mxu0 %v2774_v1  ;;  %2234 = vmatpush3.bf16.xpose.msra.mxu1 %v250_v21 }
  0x1d   :  { %2235 = vmatprep.subr.bf16.mxu1 %v2774_v1 }
  0x23   :  { %2252 = vmatpush3.bf16.xpose.msra.mxu0 %v354_v20 }
  0x24   :  { %2253 = vmatprep.subr.bf16.mxu0 %v2774_v1  ;;  %2236 = vmatpush3.bf16.xpose.msra.mxu1 %v253_v23 }
  0x25   :  { %2237 = vmatprep.subr.bf16.mxu1 %v2774_v1 }
  0x2b   :  { %2254 = vmatpush3.bf16.xpose.msra.mxu0 %v357_v22 }
  0x2c   :  { %15 = vsyncpa [#allocation3], 0  ;;  %2255 = vmatprep.subr.bf16.mxu0 %v2774_v1  ;;  %v2944_v26 = vld [vmem:[%s3728_s3 + $0x60] sm:$0xff]   ;;  %2238 = vmatpush3.bf16.xpose.msra.mxu1 %v256_v25  ;;  %v2950_v27 = vld [vmem:[%s3728_s3 + $0x30] sm:$0xff]   ;;  %s2777_s6 = smov 112   ;;  %s2778_s22 = smov 104  }
  0x2d   :  { %2239 = vmatprep.subr.bf16.mxu1 %v2774_v1  ;;  %v360_v28 = vsel %vm236_vm2, %v2944_v26, 0  ;;  %v259_v29 = vsel %vm236_vm2, %v2950_v27, 0  ;;  %v2960_v30 = vld [vmem:[%s3728_s3 + $0x68] sm:$0xff]   ;;  %v2969_v32 = vld [vmem:[%s3728_s3 + $0x70] sm:$0xff]   ;;  %v2977_v34 = vld [vmem:[%s3728_s3 + $0x38] sm:$0xff]   ;;  %s2779_s13 = smov 16  }
  0x2e   :  { %v363_v31 = vsel %vm236_vm2, %v2960_v30, 0  ;;  %v366_v33 = vsel %vm236_vm2, %v2969_v32, 0  ;;  %v262_v35 = vsel %vm236_vm2, %v2977_v34, 0  ;;  %v2984_v36 = vld [vmem:[%s3728_s3 + $0x78] sm:$0xff]   ;;  %v2045_v38 = vld [vmem:[%s3727_s2] sm:$0xff]   ;;  %s2776_s2 = smov 120  }
  0x2f   :  { %v369_v37 = vsel %vm236_vm2, %v2984_v36, 0  ;;  %v1972_v39 = vld [vmem:[%s3732_s7] ss:$0 sm:$0xff]  ;;  %v2046_v40 = vunpack.c.l.bf16 %v2045_v38  ;;  %v2047_v44 = vunpack.c.h.bf16 %v2045_v38  ;;  %700 = vrot.lane.b32.xlu1 %v2876_v9, %s2776_s2  ;;  %v3051_v8 = vld [vmem:[%s3729_s4 + $0x8] sm:$0xff]   ;;  %v3065_v17 = vld [vmem:[%s3729_s4 + $0x10] sm:$0xff]   ;;  %vm1635_vm4 = vcmask 261120  }
  0x30   :  { %v2041_v52 = vld [vmem:[%s3726_s1] sm:$0xff]   ;;  %v3057_v10 = vld [vmem:[%s3729_s4 + $0x48] sm:$0xff]   ;;  %v3071_v18 = vld [vmem:[%s3729_s4 + $0x50] sm:$0xff]   ;;  %s2780_s1 = smov 8   ;;  %vm1605_vm5 = vcmask 130048   ;;  %vm1608_vm6 = vcmask 195584  }
  0x31   :  { %v3015_v53 = vunpack.c.l.bf16 %v2041_v52  ;;  %v3018_v63 = vunpack.c.h.bf16 %v2041_v52  ;;  %v3040_v5 = vld [vmem:[%s3729_s4] sm:$0xff]   ;;  %v3079_v19 = vld [vmem:[%s3729_s4 + $0x18] sm:$0xff]   ;;  %v3107_v23 = vld [vmem:[%s3729_s4 + $0x28] sm:$0xff]  }
  0x32   :  { %v3045_v6 = vld [vmem:[%s3729_s4 + $0x40] sm:$0xff]   ;;  %v3085_v20 = vld [vmem:[%s3729_s4 + $0x58] sm:$0xff]  }
  0x33   :  { %2256 = vmatpush3.bf16.xpose.msra.mxu0 %v360_v28  ;;  %616 = vrot.lane.b32.xlu1 %v2867_v7, %s2776_s2  ;;  %v3093_v21 = vld [vmem:[%s3729_s4 + $0x20] sm:$0xff]  }
  0x34   :  { %2257 = vmatprep.subr.bf16.mxu0 %v2774_v1  ;;  %2240 = vmatpush3.bf16.xpose.msra.mxu1 %v259_v29  ;;  %v3099_v22 = vld [vmem:[%s3729_s4 + $0x60] sm:$0xff]  }
  0x35   :  { %2241 = vmatprep.subr.bf16.mxu1 %v2774_v1 }
  0x3b   :  { %2258 = vmatpush3.bf16.xpose.msra.mxu0 %v363_v31 }
  0x3c   :  { %2259 = vmatprep.subr.bf16.mxu0 %v2774_v1  ;;  %2242 = vmatpush3.bf16.xpose.msra.mxu1 %v262_v35 }
  0x3d   :  { %2267 = vmatprep.subr.bf16.mxu1 %v2774_v1 }
  0x43   :  { %2260 = vmatpush3.bf16.xpose.msra.mxu0 %v366_v33 }
  0x44   :  { %2261 = vmatprep.subr.bf16.mxu0 %v2774_v1 }
  0x4b   :  { %2262 = vmatpush3.bf16.xpose.msra.mxu0 %v369_v37 }
  0x4c   :  { %2287 = vmatprep.subr.bf16.mxu0 %v2774_v1 }
  0xe0   :  { %v117_v41 = vpop.f32.mrb[0].mxu0 }
  0xe1   :  { %v118_v42 = vadd.f32 %v1972_v39, %v117_v41  ;;  %v2225_v43 = vpop.f32.mrb[1].mxu0  ;;  %v3131_v41 = vld [vmem:[%s3729_s4 + $0x38] sm:$0xff]  }
  0xe2   :  { %v120_v45 = vpop.f32.mrb[2].mxu0  ;;  %v3146_v43 = vld [vmem:[%s3729_s4 + $0x78] sm:$0xff]  }
  0xe3   :  { %v128_v46 = vadd.f32 %v2046_v40, %v118_v42  ;;  %v121_v47 = vadd.f32 %v1972_v39, %v120_v45  ;;  %v2226_v48 = vpop.f32.mrb[3].mxu0  ;;  %v3117_v39 = vld [vmem:[%s3729_s4 + $0x30] sm:$0xff]   ;;  %v3122_v40 = vld [vmem:[%s3729_s4 + $0x68] sm:$0xff]  }
  0xe4   :  { %v3136_v42 = vld [vmem:[%s3729_s4 + $0x70] sm:$0xff]  }
  0xe5   :  { %v2996_v49 = vpack.c.bf16 %v128_v46, %v128_v46  ;;  %v129_v50 = vadd.f32 %v2047_v44, %v121_v47  ;;  %v701_v44 = vpop.permute.xlu1 %700 }
  0xe7   :  { %v2998_v51 = vpack.c.bf16 %v129_v50, %v129_v50  ;;  %2244 = vmatmul.mubr.msk.bf16.vlgmr.msra.gmra.mrb[0].mxu1 %vm236_vm2, %v2996_v49 }
  0xe8   :  { %2283 = vmatprep.mubr.msk.bf16.mxu1 %vm2775_vm0, %v2774_v1  ;;  %2268 = vmatpush3.bf16.msra.mxu1 %v3040_v5 }
  0xe9   :  { %2264 = vmatmul.mubr.msk.bf16.vlgmr.msra.gmra.mrb[4].mxu0 %vm236_vm2, %v2998_v51  ;;  %2269 = vmatprep.subr.bf16.mxu1 %v2774_v1  ;;  %v617_v45 = vpop.permute.xlu1 %616 }
  0xea   :  { %2303 = vmatprep.mubr.msk.bf16.mxu0 %vm2775_vm0, %v2774_v1  ;;  %2288 = vmatpush3.bf16.msra.mxu0 %v3045_v6 }
  0xeb   :  { %2289 = vmatprep.subr.bf16.mxu0 %v2774_v1 }
  0xec   :  { %2270 = vmatpush3.bf16.msra.mxu1 %v3051_v8 }
  0xed   :  { %2271 = vmatprep.subr.bf16.mxu1 %v2774_v1 }
  0xee   :  { %2290 = vmatpush3.bf16.msra.mxu0 %v3057_v10 }
  0xef   :  { %2291 = vmatprep.subr.bf16.mxu0 %v2774_v1 }
  0xf0   :  { %2272 = vmatpush3.bf16.msra.mxu1 %v3065_v17 }
  0xf1   :  { %2273 = vmatprep.subr.bf16.mxu1 %v2774_v1 }
  0xf2   :  { %2292 = vmatpush3.bf16.msra.mxu0 %v3071_v18 }
  0xf3   :  { %2293 = vmatprep.subr.bf16.mxu0 %v2774_v1 }
  0xf4   :  { %2274 = vmatpush3.bf16.msra.mxu1 %v3079_v19 }
  0xf5   :  { %2275 = vmatprep.subr.bf16.mxu1 %v2774_v1 }
  0xf6   :  { %2294 = vmatpush3.bf16.msra.mxu0 %v3085_v20 }
  0xf7   :  { %2295 = vmatprep.subr.bf16.mxu0 %v2774_v1 }
  0xf8   :  { %2276 = vmatpush3.bf16.msra.mxu1 %v3093_v21 }
  0xf9   :  { %2277 = vmatprep.subr.bf16.mxu1 %v2774_v1 }
  0xfa   :  { %2296 = vmatpush3.bf16.msra.mxu0 %v3099_v22 }
  0xfb   :  { %2297 = vmatprep.subr.bf16.mxu0 %v2774_v1 }
  0xfc   :  { %2278 = vmatpush3.bf16.msra.mxu1 %v3107_v23 }
  0xfd   :  { %2279 = vmatprep.subr.bf16.mxu1 %v2774_v1 }
  0xfe   :  { %2298 = vmatpush3.bf16.msra.mxu0 %v3122_v40 }
  0xff   :  { %2299 = vmatprep.subr.bf16.mxu0 %v2774_v1 }
 0x100   :  { %2280 = vmatpush3.bf16.msra.mxu1 %v3117_v39 }
 0x101   :  { %2281 = vmatprep.subr.bf16.mxu1 %v2774_v1 }
 0x102   :  { %2300 = vmatpush3.bf16.msra.mxu0 %v3136_v42 }
 0x103   :  { %2301 = vmatprep.subr.bf16.mxu0 %v2774_v1 }
 0x104   :  { %2282 = vmatpush3.bf16.msra.mxu1 %v3131_v41 }
 0x105   :  { %2307 = vmatprep.subr.bf16.mxu1 %v2774_v1 }
 0x106   :  { %2302 = vmatpush3.bf16.msra.mxu0 %v3146_v43 }
 0x107   :  { %2327 = vmatprep.subr.bf16.mxu0 %v2774_v1 }
 0x1ba   :  { %v298_v54 = vpop.f32.mrb[0].mxu1 }
 0x1bb   :  { %v411_v55 = vmul.f32 0.35355338, %v298_v54  ;;  %v2245_v56 = vpop.f32.mrb[1].mxu1 }
 0x1bc   :  { %v301_v57 = vpop.f32.mrb[2].mxu1  ;;  %v405_v58 = vpop.f32.mrb[4].mxu0 }
 0x1bd   :  { %v412_v59 = vmul.f32 0.35355338, %v405_v58  ;;  %v2246_v60 = vpop.f32.mrb[3].mxu1  ;;  %v2265_v61 = vpop.f32.mrb[5].mxu0  ;;  %v413_v62 = vadd.f32 %v3015_v53, %v411_v55 }
 0x1be   :  { %v408_v0 = vpop.f32.mrb[6].mxu0  ;;  %v637_v60 = vsel %vm236_vm2, %v617_v45, 0 }
 0x1bf   :  { %v2266_v2 = vpop.f32.mrb[7].mxu0  ;;  %415 = vmax.xlane.f32.xlu0 %v413_v62  ;;  %v414_v3 = vadd.f32 %v3018_v63, %v412_v59  ;;  %v720_v59 = vsel %vm236_vm2, %v701_v44, 0 }
 0x1c3   :  { %417 = vmax.xlane.f32.xlu0 %v414_v3 }
 0x1d9   :  { %614 = vrot.lane.b32.xlu0 %v2856_v4, %s2776_s2 }
 0x1dd   :  { %618 = vrot.lane.b32.xlu0 %v2888_v12, %s2776_s2 }
 0x1e1   :  { %620 = vrot.lane.b32.xlu0 %v2898_v14, %s2776_s2 }
 0x1e5   :  { %622 = vrot.lane.b32.xlu0 %v2911_v16, %s2776_s2 }
 0x1e9   :  { %624 = vrot.lane.b32.xlu0 %v2935_v24, %s2776_s2 }
 0x1ed   :  { %626 = vrot.lane.b32.xlu0 %v2950_v27, %s2776_s2 }
 0x1f1   :  { %628 = vrot.lane.b32.xlu0 %v2977_v34, %s2776_s2 }
 0x1f5   :  { %612 = vrot.lane.b32.xlu0 %v2996_v49, %s2776_s2 }
 0x24c   :  { %v416_v25 = vpop.xlane.xlu0 %415 }
 0x24d   :  { %v419_v28 = vsub.f32 %v413_v62, %v416_v25 }
 0x24f   :  { %v421_v29 = vmul.f32 1.442695, %v419_v28 }
 0x250   :  { %v418_v31 = vpop.xlane.xlu0 %417 }
 0x251   :  { %2674 = vpow2.f32 %v421_v29  ;;  %v420_v33 = vsub.f32 %v414_v3, %v418_v31 }
 0x253   :  { %v423_v35 = vmul.f32 1.442695, %v420_v33 }
 0x254   :  { %v615_v52 = vpop.permute.xlu0 %614 }
 0x255   :  { %2676 = vpow2.f32 %v423_v35  ;;  %v634_v54 = vsel %vm236_vm2, %v615_v52, 0 }
 0x258   :  { %v619_v0 = vpop.permute.xlu0 %618 }
 0x259   :  { %v640_v2 = vsel %vm236_vm2, %v619_v0, 0 }
 0x25b   :  { %v2675_v37 = vpop.eup %2674 }
 0x25c   :  { %425 = vadd.xlane.f32.xlu1 %v2675_v37  ;;  %v621_v28 = vpop.permute.xlu0 %620 }
 0x25d   :  { %v643_v29 = vsel %vm236_vm2, %v621_v28, 0 }
 0x25f   :  { %v2677_v38 = vpop.eup %2676 }
 0x260   :  { %427 = vadd.xlane.f32.xlu1 %v2677_v38  ;;  %v623_v35 = vpop.permute.xlu0 %622 }
 0x264   :  { %v625_v45 = vpop.permute.xlu0 %624 }
 0x271   :  { %702 = vrot.lane.b32.xlu1 %v2883_v11, %s2776_s2 }
 0x275   :  { %704 = vrot.lane.b32.xlu1 %v2893_v13, %s2776_s2 }
 0x279   :  { %706 = vrot.lane.b32.xlu1 %v2903_v15, %s2776_s2 }
 0x27d   :  { %708 = vrot.lane.b32.xlu1 %v2944_v26, %s2776_s2 }
 0x281   :  { %710 = vrot.lane.b32.xlu1 %v2960_v30, %s2776_s2 }
 0x285   :  { %712 = vrot.lane.b32.xlu1 %v2969_v32, %s2776_s2 }
 0x289   :  { %714 = vrot.lane.b32.xlu1 %v2984_v36, %s2776_s2 }
 0x28d   :  { %698 = vrot.lane.b32.xlu1 %v2998_v51, %s2776_s2 }
 0x2e9   :  { %v426_v46 = vpop.xlane.xlu1 %425 }
 0x2ea   :  { %2678 = vrcp.f32 %v426_v46  ;;  %v649_v46 = vsel %vm236_vm2, %v625_v45, 0 }
 0x2ed   :  { %v428_v47 = vpop.xlane.xlu1 %427 }
 0x2ee   :  { %2680 = vrcp.f32 %v428_v47 }
 0x2f1   :  { %v703_v61 = vpop.permute.xlu1 %702 }
 0x2f2   :  { %v723_v62 = vsel %vm236_vm2, %v703_v61, 0 }
 0x2f4   :  { %v2679_v48 = vpop.eup %2678 }
 0x2f5   :  { %v431_v50 = vmul.f32 %v2679_v48, %v2675_v37  ;;  %v705_v3 = vpop.permute.xlu1 %704  ;;  %v646_v37 = vsel %vm236_vm2, %v623_v35, 0 }
 0x2f6   :  { %v726_v25 = vsel %vm236_vm2, %v705_v3, 0 }
 0x2f7   :  { %v433_v55 = vpack.c.bf16 %v431_v50, %v431_v50  ;;  %v627_v50 = vpop.permute.xlu0 %626 }
 0x2f8   :  { %v2681_v56 = vpop.eup %2680  ;;  %v652_v52 = vsel %vm236_vm2, %v627_v50, 0 }
 0x2f9   :  { %2284 = vmatmul.mubr.bf16.vlgmr.msra.gmra.mrb[4].mxu1 %v433_v55  ;;  %v432_v57 = vmul.f32 %v2681_v56, %v2677_v38  ;;  %v707_v31 = vpop.permute.xlu1 %706 }
 0x2fa   :  { %2308 = vmatpush3.bf16.xpose.msra.mxu1 %v634_v54  ;;  %2323 = vmatprep.mubr.msk.bf16.mxu1 %vm2775_vm0, %v2774_v1  ;;  %v729_v33 = vsel %vm236_vm2, %v707_v31, 0 }
 0x2fb   :  { %v434_v58 = vpack.c.bf16 %v432_v57, %v432_v57  ;;  %2309 = vmatprep.subr.bf16.mxu1 %v2774_v1  ;;  %v629_v56 = vpop.permute.xlu0 %628 }
 0x2fc   :  { %v655_v57 = vsel %vm236_vm2, %v629_v56, 0 }
 0x2fd   :  { %2304 = vmatmul.mubr.bf16.vlgmr.msra.gmra.mrb[8].mxu0 %v434_v58  ;;  %v709_v38 = vpop.permute.xlu1 %708 }
 0x2fe   :  { %2328 = vmatpush3.bf16.xpose.msra.mxu0 %v720_v59  ;;  %2343 = vmatprep.mubr.msk.bf16.mxu0 %vm2775_vm0, %v2774_v1  ;;  %v732_v44 = vsel %vm236_vm2, %v709_v38, 0 }
 0x2ff   :  { %2329 = vmatprep.subr.bf16.mxu0 %v2774_v1 }
 0x301   :  { %v711_v47 = vpop.permute.xlu1 %710 }
 0x302   :  { %2310 = vmatpush3.bf16.xpose.msra.mxu1 %v637_v60  ;;  %v735_v48 = vsel %vm236_vm2, %v711_v47, 0  ;;  %v613_v60 = vpop.permute.xlu0 %612 }
 0x303   :  { %2311 = vmatprep.subr.bf16.mxu1 %v2774_v1 }
 0x305   :  { %v713_v54 = vpop.permute.xlu1 %712 }
 0x306   :  { %2330 = vmatpush3.bf16.xpose.msra.mxu0 %v723_v62  ;;  %v738_v55 = vsel %vm236_vm2, %v713_v54, 0 }
 0x307   :  { %2331 = vmatprep.subr.bf16.mxu0 %v2774_v1 }
 0x309   :  { %v715_v58 = vpop.permute.xlu1 %714 }
 0x30a   :  { %2312 = vmatpush3.bf16.xpose.msra.mxu1 %v640_v2  ;;  %v741_v59 = vsel %vm236_vm2, %v715_v58, 0 }
 0x30b   :  { %2313 = vmatprep.subr.bf16.mxu1 %v2774_v1 }
 0x30d   :  { %v699_v61 = vpop.permute.xlu1 %698 }
 0x30e   :  { %2332 = vmatpush3.bf16.xpose.msra.mxu0 %v726_v25 }
 0x30f   :  { %2333 = vmatprep.subr.bf16.mxu0 %v2774_v1 }
 0x312   :  { %2314 = vmatpush3.bf16.xpose.msra.mxu1 %v643_v29 }
 0x313   :  { %2315 = vmatprep.subr.bf16.mxu1 %v2774_v1 }
 0x316   :  { %2334 = vmatpush3.bf16.xpose.msra.mxu0 %v729_v33 }
 0x317   :  { %2335 = vmatprep.subr.bf16.mxu0 %v2774_v1 }
 0x31a   :  { %2316 = vmatpush3.bf16.xpose.msra.mxu1 %v646_v37 }
 0x31b   :  { %2317 = vmatprep.subr.bf16.mxu1 %v2774_v1 }
 0x31e   :  { %2336 = vmatpush3.bf16.xpose.msra.mxu0 %v732_v44 }
 0x31f   :  { %2337 = vmatprep.subr.bf16.mxu0 %v2774_v1 }
 0x322   :  { %2318 = vmatpush3.bf16.xpose.msra.mxu1 %v649_v46 }
 0x323   :  { %2319 = vmatprep.subr.bf16.mxu1 %v2774_v1 }
 0x326   :  { %2338 = vmatpush3.bf16.xpose.msra.mxu0 %v735_v48 }
 0x327   :  { %2339 = vmatprep.subr.bf16.mxu0 %v2774_v1 }
 0x32a   :  { %2320 = vmatpush3.bf16.xpose.msra.mxu1 %v652_v52 }
 0x32b   :  { %2321 = vmatprep.subr.bf16.mxu1 %v2774_v1 }
 0x32e   :  { %2340 = vmatpush3.bf16.xpose.msra.mxu0 %v738_v55 }
 0x32f   :  { %2341 = vmatprep.subr.bf16.mxu0 %v2774_v1 }
 0x332   :  { %2322 = vmatpush3.bf16.xpose.msra.mxu1 %v655_v57 }
 0x333   :  { %2347 = vmatprep.subr.bf16.mxu1 %v2774_v1 }
 0x336   :  { %2342 = vmatpush3.bf16.xpose.msra.mxu0 %v741_v59 }
 0x337   :  { %2367 = vmatprep.subr.bf16.mxu0 %v2774_v1 }
 0x339   :  { %2324 = vmatmul.mubr.msk.bf16.vlgmr.msra.gmra.mrb[8].mxu1 %vm236_vm2, %v613_v60 }
 0x33a   :  { %2363 = vmatprep.mubr.msk.bf16.mxu1 %vm2775_vm0, %v2774_v1 }
 0x33d   :  { %2344 = vmatmul.mubr.msk.bf16.vlgmr.msra.gmra.mrb[12].mxu0 %vm236_vm2, %v699_v61 }
 0x33e   :  { %2383 = vmatprep.mubr.msk.bf16.mxu0 %vm2775_vm0, %v2774_v1 }
 0x3cc   :  { %v3207_v62 = vpop.f32.mrb[4].mxu1 }
 0x3cd   :  { %v2285_v0 = vpop.f32.mrb[5].mxu1 }
 0x3ce   :  { %v520_v2 = vpop.f32.mrb[6].mxu1 }
 0x3cf   :  { %v2286_v3 = vpop.f32.mrb[7].mxu1 }
 0x3d0   :  { %v3209_v25 = vpop.f32.mrb[8].mxu0 }
 0x3d1   :  { %v2305_v28 = vpop.f32.mrb[9].mxu0 }
 0x3d2   :  { %v608_v29 = vpop.f32.mrb[10].mxu0 }
 0x3d3   :  { %v2306_v31 = vpop.f32.mrb[11].mxu0 }
 0x40c   :  { %v691_v33 = vpop.f32.mrb[8].mxu1 }
 0x40d   :  { %v783_v35 = vmul.f32 0.35355338, %v691_v33  ;;  %v2325_v37 = vpop.f32.mrb[9].mxu1 }
 0x40e   :  { %v694_v38 = vpop.f32.mrb[10].mxu1 }
 0x40f   :  { %v2326_v44 = vpop.f32.mrb[11].mxu1  ;;  %v785_v45 = vadd.f32 %v3015_v53, %v783_v35 }
 0x410   :  { %v777_v46 = vpop.f32.mrb[12].mxu0 }
 0x411   :  { %v784_v47 = vmul.f32 0.35355338, %v777_v46  ;;  %v2345_v48 = vpop.f32.mrb[13].mxu0  ;;  %787 = vmax.xlane.f32.xlu0 %v785_v45 }
 0x412   :  { %v780_v50 = vpop.f32.mrb[14].mxu0 }
 0x413   :  { %v2346_v52 = vpop.f32.mrb[15].mxu0  ;;  %v786_v54 = vadd.f32 %v3018_v63, %v784_v47 }
 0x415   :  { %789 = vmax.xlane.f32.xlu1 %v786_v54 }
 0x426   :  { %871 = vrot.lane.b32.xlu1 %v3045_v6, %s2776_s2 }
 0x427   :  { %807 = vrot.lane.b32.xlu0 %v3040_v5, %s2776_s2 }
 0x42a   :  { %873 = vrot.lane.b32.xlu1 %v3057_v10, %s2776_s2 }
 0x42b   :  { %809 = vrot.lane.b32.xlu0 %v3051_v8, %s2776_s2 }
 0x42e   :  { %875 = vrot.lane.b32.xlu1 %v3071_v18, %s2776_s2 }
 0x42f   :  { %811 = vrot.lane.b32.xlu0 %v3065_v17, %s2776_s2 }
 0x432   :  { %877 = vrot.lane.b32.xlu1 %v3085_v20, %s2776_s2 }
 0x433   :  { %813 = vrot.lane.b32.xlu0 %v3079_v19, %s2776_s2 }
 0x436   :  { %879 = vrot.lane.b32.xlu1 %v3099_v22, %s2776_s2 }
 0x437   :  { %815 = vrot.lane.b32.xlu0 %v3093_v21, %s2776_s2 }
 0x43a   :  { %881 = vrot.lane.b32.xlu1 %v3122_v40, %s2776_s2 }
 0x43b   :  { %817 = vrot.lane.b32.xlu0 %v3107_v23, %s2776_s2 }
 0x43e   :  { %883 = vrot.lane.b32.xlu1 %v3136_v42, %s2776_s2 }
 0x43f   :  { %819 = vrot.lane.b32.xlu0 %v3117_v39, %s2776_s2 }
 0x442   :  { %885 = vrot.lane.b32.xlu1 %v3146_v43, %s2776_s2 }
 0x443   :  { %821 = vrot.lane.b32.xlu0 %v3131_v41, %s2776_s2 }
 0x446   :  { %1022 = vrot.lane.b32.xlu1 %v2876_v9, %s2777_s6 }
 0x49e   :  { %v788_v55 = vpop.xlane.xlu0 %787 }
 0x49f   :  { %v791_v56 = vsub.f32 %v785_v45, %v788_v55 }
 0x4a1   :  { %v793_v57 = vmul.f32 1.442695, %v791_v56 }
 0x4a2   :  { %v790_v58 = vpop.xlane.xlu1 %789  ;;  %v808_v59 = vpop.permute.xlu0 %807 }
 0x4a3   :  { %2682 = vpow2.f32 %v793_v57  ;;  %v792_v60 = vsub.f32 %v786_v54, %v790_v58  ;;  %2348 = vmatpush3.bf16.msra.mxu1 %v808_v59 }
 0x4a4   :  { %2349 = vmatprep.subr.bf16.mxu1 %v2774_v1 }
 0x4a5   :  { %v795_v61 = vmul.f32 1.442695, %v792_v60 }
 0x4a6   :  { %v872_v0 = vpop.permute.xlu1 %871  ;;  %v810_v2 = vpop.permute.xlu0 %809 }
 0x4a7   :  { %2684 = vpow2.f32 %v795_v61  ;;  %2368 = vmatpush3.bf16.msra.mxu0 %v872_v0  ;;  %2350 = vmatpush3.bf16.msra.mxu1 %v810_v2 }
 0x4a8   :  { %2369 = vmatprep.subr.bf16.mxu0 %v2774_v1  ;;  %2351 = vmatprep.subr.bf16.mxu1 %v2774_v1 }
 0x4aa   :  { %v874_v9 = vpop.permute.xlu1 %873  ;;  %v812_v3 = vpop.permute.xlu0 %811 }
 0x4ab   :  { %2370 = vmatpush3.bf16.msra.mxu0 %v874_v9  ;;  %2352 = vmatpush3.bf16.msra.mxu1 %v812_v3 }
 0x4ac   :  { %2371 = vmatprep.subr.bf16.mxu0 %v2774_v1  ;;  %2353 = vmatprep.subr.bf16.mxu1 %v2774_v1 }
 0x4ad   :  { %v2683_v28 = vpop.eup %2682 }
 0x4ae   :  { %797 = vadd.xlane.f32.xlu0 %v2683_v28  ;;  %v876_v29 = vpop.permute.xlu1 %875  ;;  %v814_v31 = vpop.permute.xlu0 %813 }
 0x4af   :  { %2372 = vmatpush3.bf16.msra.mxu0 %v876_v29  ;;  %2354 = vmatpush3.bf16.msra.mxu1 %v814_v31 }
 0x4b0   :  { %2373 = vmatprep.subr.bf16.mxu0 %v2774_v1  ;;  %2355 = vmatprep.subr.bf16.mxu1 %v2774_v1 }
 0x4b1   :  { %v2685_v33 = vpop.eup %2684 }
 0x4b2   :  { %799 = vadd.xlane.f32.xlu1 %v2685_v33  ;;  %v878_v35 = vpop.permute.xlu1 %877  ;;  %v816_v37 = vpop.permute.xlu0 %815 }
 0x4b3   :  { %2374 = vmatpush3.bf16.msra.mxu0 %v878_v35  ;;  %2356 = vmatpush3.bf16.msra.mxu1 %v816_v37 }
 0x4b4   :  { %2375 = vmatprep.subr.bf16.mxu0 %v2774_v1  ;;  %2357 = vmatprep.subr.bf16.mxu1 %v2774_v1 }
 0x4b6   :  { %v880_v38 = vpop.permute.xlu1 %879  ;;  %v818_v44 = vpop.permute.xlu0 %817 }
 0x4b7   :  { %2376 = vmatpush3.bf16.msra.mxu0 %v880_v38  ;;  %2358 = vmatpush3.bf16.msra.mxu1 %v818_v44 }
 0x4b8   :  { %2377 = vmatprep.subr.bf16.mxu0 %v2774_v1  ;;  %2359 = vmatprep.subr.bf16.mxu1 %v2774_v1 }
 0x4ba   :  { %v882_v45 = vpop.permute.xlu1 %881  ;;  %v820_v46 = vpop.permute.xlu0 %819 }
 0x4bb   :  { %2378 = vmatpush3.bf16.msra.mxu0 %v882_v45  ;;  %2360 = vmatpush3.bf16.msra.mxu1 %v820_v46 }
 0x4bc   :  { %2379 = vmatprep.subr.bf16.mxu0 %v2774_v1  ;;  %2361 = vmatprep.subr.bf16.mxu1 %v2774_v1 }
 0x4be   :  { %v884_v47 = vpop.permute.xlu1 %883  ;;  %v822_v48 = vpop.permute.xlu0 %821 }
 0x4bf   :  { %2380 = vmatpush3.bf16.msra.mxu0 %v884_v47  ;;  %2362 = vmatpush3.bf16.msra.mxu1 %v822_v48 }
 0x4c0   :  { %2381 = vmatprep.subr.bf16.mxu0 %v2774_v1  ;;  %2387 = vmatprep.subr.bf16.mxu1 %v2774_v1 }
 0x4c2   :  { %v886_v50 = vpop.permute.xlu1 %885 }
 0x4c3   :  { %1024 = vrot.lane.b32.xlu1 %v2883_v11, %s2777_s6  ;;  %2382 = vmatpush3.bf16.msra.mxu0 %v886_v50 }
 0x4c4   :  { %937 = vrot.lane.b32.xlu0 %v2856_v4, %s2777_s6  ;;  %2407 = vmatprep.subr.bf16.mxu0 %v2774_v1 }
 0x4c6   :  { %v1023_v4 = vpop.permute.xlu1 %1022 }
 0x4c7   :  { %1026 = vrot.lane.b32.xlu1 %v2893_v13, %s2777_s6 }
 0x4c8   :  { %939 = vrot.lane.b32.xlu0 %v2867_v7, %s2777_s6 }
 0x4cb   :  { %1028 = vrot.lane.b32.xlu1 %v2903_v15, %s2777_s6 }
 0x4cc   :  { %941 = vrot.lane.b32.xlu0 %v2888_v12, %s2777_s6 }
 0x4cf   :  { %1030 = vrot.lane.b32.xlu1 %v2944_v26, %s2777_s6 }
 0x4d0   :  { %943 = vrot.lane.b32.xlu0 %v2898_v14, %s2777_s6 }
 0x4d3   :  { %1032 = vrot.lane.b32.xlu1 %v2960_v30, %s2777_s6  ;;  %v1042_v30 = vsel %vm236_vm2, %v1023_v4, 0 }
 0x4d4   :  { %945 = vrot.lane.b32.xlu0 %v2911_v16, %s2777_s6 }
 0x4d7   :  { %1034 = vrot.lane.b32.xlu1 %v2969_v32, %s2777_s6 }
 0x4d8   :  { %947 = vrot.lane.b32.xlu0 %v2935_v24, %s2777_s6 }
 0x4db   :  { %1036 = vrot.lane.b32.xlu1 %v2984_v36, %s2777_s6 }
 0x4dc   :  { %949 = vrot.lane.b32.xlu0 %v2950_v27, %s2777_s6 }
 0x4df   :  { %1020 = vrot.lane.b32.xlu1 %v2998_v51, %s2777_s6 }
 0x4e0   :  { %951 = vrot.lane.b32.xlu0 %v2977_v34, %s2777_s6 }
 0x4e4   :  { %935 = vrot.lane.b32.xlu0 %v2996_v49, %s2777_s6 }
 0x53b   :  { %v798_v7 = vpop.xlane.xlu0 %797 }
 0x53c   :  { %2686 = vrcp.f32 %v798_v7 }
 0x53f   :  { %v800_v11 = vpop.xlane.xlu1 %799  ;;  %v938_v14 = vpop.permute.xlu0 %937 }
 0x540   :  { %2688 = vrcp.f32 %v800_v11  ;;  %v957_v15 = vsel %vm236_vm2, %v938_v14, 0 }
 0x543   :  { %v940_v32 = vpop.permute.xlu0 %939  ;;  %v1025_v36 = vpop.permute.xlu1 %1024 }
 0x544   :  { %v960_v34 = vsel %vm236_vm2, %v940_v32, 0  ;;  %v1045_v52 = vsel %vm236_vm2, %v1025_v36, 0 }
 0x546   :  { %v2687_v12 = vpop.eup %2686 }
 0x547   :  { %v803_v13 = vmul.f32 %v2687_v12, %v2683_v28  ;;  %v942_v54 = vpop.permute.xlu0 %941  ;;  %v1027_v56 = vpop.permute.xlu1 %1026 }
 0x548   :  { %v963_v55 = vsel %vm236_vm2, %v942_v54, 0  ;;  %v1048_v57 = vsel %vm236_vm2, %v1027_v56, 0 }
 0x549   :  { %v805_v16 = vpack.c.bf16 %v803_v13, %v803_v13 }
 0x54a   :  { %v2689_v24 = vpop.eup %2688 }
 0x54b   :  { %2364 = vmatmul.mubr.bf16.vlgmr.msra.gmra.mrb[12].mxu1 %v805_v16  ;;  %v804_v26 = vmul.f32 %v2689_v24, %v2685_v33  ;;  %v944_v58 = vpop.permute.xlu0 %943  ;;  %v1029_v60 = vpop.permute.xlu1 %1028 }
 0x54c   :  { %2388 = vmatpush3.bf16.xpose.msra.mxu1 %v957_v15  ;;  %2403 = vmatprep.mubr.msk.bf16.mxu1 %vm2775_vm0, %v2774_v1  ;;  %v966_v59 = vsel %vm236_vm2, %v944_v58, 0  ;;  %v1051_v61 = vsel %vm236_vm2, %v1029_v60, 0 }
 0x54d   :  { %v806_v27 = vpack.c.bf16 %v804_v26, %v804_v26  ;;  %2389 = vmatprep.subr.bf16.mxu1 %v2774_v1 }
 0x54f   :  { %2384 = vmatmul.mubr.bf16.vlgmr.msra.gmra.mrb[16].mxu0 %v806_v27  ;;  %v946_v0 = vpop.permute.xlu0 %945  ;;  %v1031_v9 = vpop.permute.xlu1 %1030 }
 0x550   :  { %2408 = vmatpush3.bf16.xpose.msra.mxu0 %v1042_v30  ;;  %2423 = vmatprep.mubr.msk.bf16.mxu0 %vm2775_vm0, %v2774_v1  ;;  %v969_v2 = vsel %vm236_vm2, %v946_v0, 0  ;;  %v1054_v3 = vsel %vm236_vm2, %v1031_v9, 0 }
 0x551   :  { %2409 = vmatprep.subr.bf16.mxu0 %v2774_v1 }
 0x553   :  { %v948_v28 = vpop.permute.xlu0 %947  ;;  %v1033_v31 = vpop.permute.xlu1 %1032 }
 0x554   :  { %2390 = vmatpush3.bf16.xpose.msra.mxu1 %v960_v34  ;;  %v972_v29 = vsel %vm236_vm2, %v948_v28, 0  ;;  %v1057_v33 = vsel %vm236_vm2, %v1033_v31, 0 }
 0x555   :  { %2391 = vmatprep.subr.bf16.mxu1 %v2774_v1 }
 0x557   :  { %v950_v35 = vpop.permute.xlu0 %949  ;;  %v1035_v38 = vpop.permute.xlu1 %1034 }
 0x558   :  { %2410 = vmatpush3.bf16.xpose.msra.mxu0 %v1045_v52  ;;  %v975_v37 = vsel %vm236_vm2, %v950_v35, 0  ;;  %v1060_v44 = vsel %vm236_vm2, %v1035_v38, 0  ;;  %v2720_v35 = vld [vmem:[%s3728_s3] sm:$0xff]   ;;  %v2722_v38 = vld [vmem:[%s3728_s3 + $0x8] sm:$0xff]  }
 0x559   :  { %2411 = vmatprep.subr.bf16.mxu0 %v2774_v1 }
 0x55b   :  { %v952_v45 = vpop.permute.xlu0 %951  ;;  %v1037_v47 = vpop.permute.xlu1 %1036 }
 0x55c   :  { %2392 = vmatpush3.bf16.xpose.msra.mxu1 %v963_v55  ;;  %v978_v46 = vsel %vm236_vm2, %v952_v45, 0  ;;  %v1063_v48 = vsel %vm236_vm2, %v1037_v47, 0  ;;  %v2724_v45 = vld [vmem:[%s3728_s3 + $0x10] sm:$0xff]   ;;  %v2726_v47 = vld [vmem:[%s3728_s3 + $0x18] sm:$0xff]  }
 0x55d   :  { %2393 = vmatprep.subr.bf16.mxu1 %v2774_v1 }
 0x55f   :  { %v936_v50 = vpop.permute.xlu0 %935  ;;  %v1021_v4 = vpop.permute.xlu1 %1020 }
 0x560   :  { %2412 = vmatpush3.bf16.xpose.msra.mxu0 %v1048_v57 }
 0x561   :  { %2413 = vmatprep.subr.bf16.mxu0 %v2774_v1 }
 0x564   :  { %2394 = vmatpush3.bf16.xpose.msra.mxu1 %v966_v59 }
 0x565   :  { %2395 = vmatprep.subr.bf16.mxu1 %v2774_v1 }
 0x568   :  { %2414 = vmatpush3.bf16.xpose.msra.mxu0 %v1051_v61 }
 0x569   :  { %2415 = vmatprep.subr.bf16.mxu0 %v2774_v1 }
 0x56c   :  { %2396 = vmatpush3.bf16.xpose.msra.mxu1 %v969_v2 }
 0x56d   :  { %2397 = vmatprep.subr.bf16.mxu1 %v2774_v1 }
 0x570   :  { %2416 = vmatpush3.bf16.xpose.msra.mxu0 %v1054_v3 }
 0x571   :  { %2417 = vmatprep.subr.bf16.mxu0 %v2774_v1 }
 0x574   :  { %2398 = vmatpush3.bf16.xpose.msra.mxu1 %v972_v29 }
 0x575   :  { %2399 = vmatprep.subr.bf16.mxu1 %v2774_v1 }
 0x578   :  { %2418 = vmatpush3.bf16.xpose.msra.mxu0 %v1057_v33  ;;  %v2719_v33 = vld [vmem:[%s3728_s3 + $0x48] sm:$0xff]  }
 0x579   :  { %2419 = vmatprep.subr.bf16.mxu0 %v2774_v1 }
 0x57c   :  { %2400 = vmatpush3.bf16.xpose.msra.mxu1 %v975_v37  ;;  %v2721_v37 = vld [vmem:[%s3728_s3 + $0x50] sm:$0xff]  }
 0x57d   :  { %2401 = vmatprep.subr.bf16.mxu1 %v2774_v1 }
 0x580   :  { %2420 = vmatpush3.bf16.xpose.msra.mxu0 %v1060_v44  ;;  %v2723_v44 = vld [vmem:[%s3728_s3 + $0x58] sm:$0xff]  }
 0x581   :  { %2421 = vmatprep.subr.bf16.mxu0 %v2774_v1 }
 0x584   :  { %2402 = vmatpush3.bf16.xpose.msra.mxu1 %v978_v46  ;;  %v2725_v46 = vld [vmem:[%s3728_s3 + $0x60] sm:$0xff]  }
 0x585   :  { %2427 = vmatprep.subr.bf16.mxu1 %v2774_v1 }
 0x588   :  { %2422 = vmatpush3.bf16.xpose.msra.mxu0 %v1063_v48  ;;  %v2727_v48 = vld [vmem:[%s3728_s3 + $0x68] sm:$0xff]  }
 0x589   :  { %2447 = vmatprep.subr.bf16.mxu0 %v2774_v1 }
 0x58b   :  { %2404 = vmatmul.mubr.msk.bf16.vlgmr.msra.gmra.mrb[16].mxu1 %vm236_vm2, %v936_v50  ;;  %v2728_v50 = vld [vmem:[%s3728_s3 + $0x20] sm:$0xff]  }
 0x58c   :  { %2443 = vmatprep.mubr.msk.bf16.mxu1 %vm2775_vm0, %v2774_v1 }
 0x58f   :  { %2424 = vmatmul.mubr.msk.bf16.vlgmr.msra.gmra.mrb[20].mxu0 %vm236_vm2, %v1021_v4  ;;  %v2729_v4 = vld [vmem:[%s3728_s3 + $0x70] sm:$0xff]  }
 0x590   :  { %2463 = vmatprep.mubr.msk.bf16.mxu0 %vm2775_vm0, %v2774_v1 }
 0x61e   :  { %v3339_v7 = vpop.f32.mrb[12].mxu1 }
 0x61f   :  { %v2365_v11 = vpop.f32.mrb[13].mxu1 }
 0x620   :  { %v868_v12 = vpop.f32.mrb[14].mxu1  ;;  %v2730_v11 = vld [vmem:[%s3728_s3 + $0x28] sm:$0xff]  }
 0x621   :  { %v2366_v13 = vpop.f32.mrb[15].mxu1  ;;  %v2731_v12 = vld [vmem:[%s3728_s3 + $0x78] sm:$0xff]  }
 0x622   :  { %v3341_v14 = vpop.f32.mrb[16].mxu0  ;;  %v2732_v13 = vld [vmem:[%s3728_s3 + $0x30] sm:$0xff]  }
 0x623   :  { %v2605_v15 = vpack.i.bf16 %v3341_v14, %v3339_v7  ;;  %v2385_v16 = vpop.f32.mrb[17].mxu0  ;;  %v2656_v14 = vld [vmem:[%s3733_s8] sm:$0xff]  }
 0x624   :  { %v932_v24 = vpop.f32.mrb[18].mxu0  ;;  %v2733_v16 = vld [vmem:[%s3728_s3 + $0x38] sm:$0xff]  }
 0x625   :  { %v2386_v26 = vpop.f32.mrb[19].mxu0 }
 0x65e   :  { %v1014_v27 = vpop.f32.mrb[16].mxu1 }
 0x65f   :  { %v1105_v30 = vmul.f32 0.35355338, %v1014_v27  ;;  %v2405_v32 = vpop.f32.mrb[17].mxu1 }
 0x660   :  { %v1017_v34 = vpop.f32.mrb[18].mxu1 }
 0x661   :  { %v2406_v36 = vpop.f32.mrb[19].mxu1  ;;  %v1107_v52 = vadd.f32 %v3015_v53, %v1105_v30 }
 0x662   :  { %v1099_v54 = vpop.f32.mrb[20].mxu0 }
 0x663   :  { %v1106_v55 = vmul.f32 0.35355338, %v1099_v54  ;;  %v2425_v56 = vpop.f32.mrb[21].mxu0  ;;  %1109 = vmax.xlane.f32.xlu0 %v1107_v52 }
 0x664   :  { %v1102_v57 = vpop.f32.mrb[22].mxu0 }
 0x665   :  { %v2426_v58 = vpop.f32.mrb[23].mxu0  ;;  %v1108_v59 = vadd.f32 %v3018_v63, %v1106_v55 }
 0x667   :  { %1111 = vmax.xlane.f32.xlu1 %v1108_v59 }
 0x678   :  { %1193 = vrot.lane.b32.xlu1 %v3045_v6, %s2777_s6 }
 0x679   :  { %1129 = vrot.lane.b32.xlu0 %v3040_v5, %s2777_s6  ;;  %v2718_v5 = vld [vmem:[%s3728_s3 + $0x40] sm:$0xff]  }
 0x67c   :  { %1195 = vrot.lane.b32.xlu1 %v3057_v10, %s2777_s6 }
 0x67d   :  { %1131 = vrot.lane.b32.xlu0 %v3051_v8, %s2777_s6 }
 0x680   :  { %1197 = vrot.lane.b32.xlu1 %v3071_v18, %s2777_s6 }
 0x681   :  { %1133 = vrot.lane.b32.xlu0 %v3065_v17, %s2777_s6 }
 0x684   :  { %1199 = vrot.lane.b32.xlu1 %v3085_v20, %s2777_s6 }
 0x685   :  { %1135 = vrot.lane.b32.xlu0 %v3079_v19, %s2777_s6 }
 0x688   :  { %1201 = vrot.lane.b32.xlu1 %v3099_v22, %s2777_s6 }
 0x689   :  { %1137 = vrot.lane.b32.xlu0 %v3093_v21, %s2777_s6 }
 0x68c   :  { %1203 = vrot.lane.b32.xlu1 %v3122_v40, %s2777_s6 }
 0x68d   :  { %1139 = vrot.lane.b32.xlu0 %v3107_v23, %s2777_s6 }
 0x690   :  { %1205 = vrot.lane.b32.xlu1 %v3136_v42, %s2777_s6 }
 0x691   :  { %1141 = vrot.lane.b32.xlu0 %v3117_v39, %s2777_s6 }
 0x694   :  { %1207 = vrot.lane.b32.xlu1 %v3146_v43, %s2777_s6 }
 0x695   :  { %1143 = vrot.lane.b32.xlu0 %v3131_v41, %s2777_s6 }
 0x698   :  { %1344 = vrot.lane.b32.xlu1 %v2718_v5, %s2778_s22 }
 0x6f0   :  { %v1110_v6 = vpop.xlane.xlu0 %1109 }
 0x6f1   :  { %v1113_v8 = vsub.f32 %v1107_v52, %v1110_v6 }
 0x6f3   :  { %v1115_v10 = vmul.f32 1.442695, %v1113_v8 }
 0x6f4   :  { %v1112_v17 = vpop.xlane.xlu1 %1111  ;;  %v1130_v18 = vpop.permute.xlu0 %1129 }
 0x6f5   :  { %2690 = vpow2.f32 %v1115_v10  ;;  %v1114_v19 = vsub.f32 %v1108_v59, %v1112_v17  ;;  %2428 = vmatpush3.bf16.msra.mxu1 %v1130_v18 }
 0x6f6   :  { %2429 = vmatprep.subr.bf16.mxu1 %v2774_v1 }
 0x6f7   :  { %v1117_v20 = vmul.f32 1.442695, %v1114_v19 }
 0x6f8   :  { %v1194_v21 = vpop.permute.xlu1 %1193  ;;  %v1132_v22 = vpop.permute.xlu0 %1131 }
 0x6f9   :  { %2692 = vpow2.f32 %v1117_v20  ;;  %2448 = vmatpush3.bf16.msra.mxu0 %v1194_v21  ;;  %2430 = vmatpush3.bf16.msra.mxu1 %v1132_v22 }
 0x6fa   :  { %2449 = vmatprep.subr.bf16.mxu0 %v2774_v1  ;;  %2431 = vmatprep.subr.bf16.mxu1 %v2774_v1 }
 0x6fc   :  { %v1196_v23 = vpop.permute.xlu1 %1195  ;;  %v1134_v39 = vpop.permute.xlu0 %1133 }
 0x6fd   :  { %2450 = vmatpush3.bf16.msra.mxu0 %v1196_v23  ;;  %2432 = vmatpush3.bf16.msra.mxu1 %v1134_v39 }
 0x6fe   :  { %2451 = vmatprep.subr.bf16.mxu0 %v2774_v1  ;;  %2433 = vmatprep.subr.bf16.mxu1 %v2774_v1 }
 0x6ff   :  { %v3388_v40 = vpop.eup %2690 }
 0x700   :  { %1119 = vadd.xlane.f32.xlu0 %v3388_v40  ;;  %v1198_v41 = vpop.permute.xlu1 %1197  ;;  %v1136_v42 = vpop.permute.xlu0 %1135 }
 0x701   :  { %2452 = vmatpush3.bf16.msra.mxu0 %v1198_v41  ;;  %2434 = vmatpush3.bf16.msra.mxu1 %v1136_v42 }
 0x702   :  { %2453 = vmatprep.subr.bf16.mxu0 %v2774_v1  ;;  %2435 = vmatprep.subr.bf16.mxu1 %v2774_v1 }
 0x703   :  { %v3393_v43 = vpop.eup %2692 }
 0x704   :  { %1121 = vadd.xlane.f32.xlu1 %v3393_v43  ;;  %v1200_v60 = vpop.permute.xlu1 %1199  ;;  %v1138_v61 = vpop.permute.xlu0 %1137 }
 0x705   :  { %2454 = vmatpush3.bf16.msra.mxu0 %v1200_v60  ;;  %2436 = vmatpush3.bf16.msra.mxu1 %v1138_v61 }
 0x706   :  { %2455 = vmatprep.subr.bf16.mxu0 %v2774_v1  ;;  %2437 = vmatprep.subr.bf16.mxu1 %v2774_v1 }
 0x708   :  { %v1202_v0 = vpop.permute.xlu1 %1201  ;;  %v1140_v2 = vpop.permute.xlu0 %1139 }
 0x709   :  { %2456 = vmatpush3.bf16.msra.mxu0 %v1202_v0  ;;  %2438 = vmatpush3.bf16.msra.mxu1 %v1140_v2 }
 0x70a   :  { %2457 = vmatprep.subr.bf16.mxu0 %v2774_v1  ;;  %2439 = vmatprep.subr.bf16.mxu1 %v2774_v1 }
 0x70c   :  { %v1204_v9 = vpop.permute.xlu1 %1203  ;;  %v1142_v3 = vpop.permute.xlu0 %1141 }
 0x70d   :  { %2458 = vmatpush3.bf16.msra.mxu0 %v1204_v9  ;;  %2440 = vmatpush3.bf16.msra.mxu1 %v1142_v3 }
 0x70e   :  { %2459 = vmatprep.subr.bf16.mxu0 %v2774_v1  ;;  %2441 = vmatprep.subr.bf16.mxu1 %v2774_v1 }
 0x710   :  { %v1206_v28 = vpop.permute.xlu1 %1205  ;;  %v1144_v29 = vpop.permute.xlu0 %1143 }
 0x711   :  { %2460 = vmatpush3.bf16.msra.mxu0 %v1206_v28  ;;  %2442 = vmatpush3.bf16.msra.mxu1 %v1144_v29 }
 0x712   :  { %2461 = vmatprep.subr.bf16.mxu0 %v2774_v1  ;;  %2467 = vmatprep.subr.bf16.mxu1 %v2774_v1 }
 0x714   :  { %v1208_v31 = vpop.permute.xlu1 %1207 }
 0x715   :  { %1346 = vrot.lane.b32.xlu1 %v2719_v33, %s2778_s22  ;;  %2462 = vmatpush3.bf16.msra.mxu0 %v1208_v31 }
 0x716   :  { %1259 = vrot.lane.b32.xlu0 %v2720_v35, %s2778_s22  ;;  %2487 = vmatprep.subr.bf16.mxu0 %v2774_v1 }
 0x718   :  { %v1345_v24 = vpop.permute.xlu1 %1344 }
 0x719   :  { %1348 = vrot.lane.b32.xlu1 %v2721_v37, %s2778_s22  ;;  %v1364_v55 = vsel %vm236_vm2, %v1345_v24, 0 }
 0x71a   :  { %1261 = vrot.lane.b32.xlu0 %v2722_v38, %s2778_s22 }
 0x71d   :  { %1350 = vrot.lane.b32.xlu1 %v2723_v44, %s2778_s22 }
 0x71e   :  { %1263 = vrot.lane.b32.xlu0 %v2724_v45, %s2778_s22 }
 0x721   :  { %1352 = vrot.lane.b32.xlu1 %v2725_v46, %s2778_s22 }
 0x722   :  { %1265 = vrot.lane.b32.xlu0 %v2726_v47, %s2778_s22 }
 0x725   :  { %1354 = vrot.lane.b32.xlu1 %v2727_v48, %s2778_s22 }
 0x726   :  { %1267 = vrot.lane.b32.xlu0 %v2728_v50, %s2778_s22 }
 0x729   :  { %1356 = vrot.lane.b32.xlu1 %v2729_v4, %s2778_s22 }
 0x72a   :  { %1269 = vrot.lane.b32.xlu0 %v2730_v11, %s2778_s22 }
 0x72d   :  { %1358 = vrot.lane.b32.xlu1 %v2731_v12, %s2778_s22 }
 0x72e   :  { %1271 = vrot.lane.b32.xlu0 %v2732_v13, %s2778_s22 }
 0x731   :  { %1342 = vrot.lane.b32.xlu1 %v2998_v51, %s2778_s22 }
 0x732   :  { %1273 = vrot.lane.b32.xlu0 %v2733_v16, %s2778_s22 }
 0x736   :  { %1257 = vrot.lane.b32.xlu0 %v2996_v49, %s2778_s22 }
 0x78d   :  { %v1120_v26 = vpop.xlane.xlu0 %1119 }
 0x78e   :  { %2694 = vrcp.f32 %v1120_v26 }
 0x791   :  { %v1122_v27 = vpop.xlane.xlu1 %1121  ;;  %v1260_v34 = vpop.permute.xlu0 %1259 }
 0x792   :  { %2696 = vrcp.f32 %v1122_v27  ;;  %v1279_v51 = vsel %vm236_vm2, %v1260_v34, 0 }
 0x795   :  { %v1262_v56 = vpop.permute.xlu0 %1261  ;;  %v1347_v58 = vpop.permute.xlu1 %1346 }
 0x796   :  { %v1282_v57 = vsel %vm236_vm2, %v1262_v56, 0  ;;  %v1367_v59 = vsel %vm236_vm2, %v1347_v58, 0  ;;  %v2739_v56 = vld [vmem:[%s3729_s4 + $0x10] sm:$0xff]   ;;  %v2741_v58 = vld [vmem:[%s3729_s4 + $0x18] sm:$0xff]  }
 0x798   :  { %v2695_v30 = vpop.eup %2694 }
 0x799   :  { %v1125_v32 = vmul.f32 %v2695_v30, %v3388_v40  ;;  %v1264_v5 = vpop.permute.xlu0 %1263  ;;  %v1349_v8 = vpop.permute.xlu1 %1348 }
 0x79a   :  { %v1285_v6 = vsel %vm236_vm2, %v1264_v5, 0  ;;  %v1370_v10 = vsel %vm236_vm2, %v1349_v8, 0  ;;  %v2743_v5 = vld [vmem:[%s3729_s4 + $0x20] sm:$0xff]   ;;  %v2745_v8 = vld [vmem:[%s3729_s4 + $0x28] sm:$0xff]  }
 0x79b   :  { %v1127_v36 = vpack.c.bf16 %v1125_v32, %v1125_v32 }
 0x79c   :  { %v2697_v52 = vpop.eup %2696 }
 0x79d   :  { %2444 = vmatmul.mubr.bf16.vlgmr.msra.gmra.mrb[20].mxu1 %v1127_v36  ;;  %v1126_v54 = vmul.f32 %v2697_v52, %v3393_v43  ;;  %v1266_v17 = vpop.permute.xlu0 %1265  ;;  %v1351_v19 = vpop.permute.xlu1 %1350  ;;  %v2734_v36 = vld [vmem:[%s3729_s4 + $0x40] sm:$0xff]  }
 0x79e   :  { %2468 = vmatpush3.bf16.xpose.msra.mxu1 %v1279_v51  ;;  %2483 = vmatprep.mubr.msk.bf16.mxu1 %vm2775_vm0, %v2774_v1  ;;  %v1288_v18 = vsel %vm236_vm2, %v1266_v17, 0  ;;  %v1373_v20 = vsel %vm236_vm2, %v1351_v19, 0  ;;  %v2735_v52 = vld [vmem:[%s3729_s4] sm:$0xff]   ;;  %v2747_v17 = vld [vmem:[%s3729_s4 + $0x30] sm:$0xff]  }
 0x79f   :  { %v1128_v49 = vpack.c.bf16 %v1126_v54, %v1126_v54  ;;  %2469 = vmatprep.subr.bf16.mxu1 %v2774_v1  ;;  %v2736_v54 = vld [vmem:[%s3729_s4 + $0x48] sm:$0xff]  }
 0x7a1   :  { %2464 = vmatmul.mubr.bf16.vlgmr.msra.gmra.mrb[24].mxu0 %v1128_v49  ;;  %v1268_v21 = vpop.permute.xlu0 %1267  ;;  %v1353_v23 = vpop.permute.xlu1 %1352  ;;  %v2737_v49 = vld [vmem:[%s3729_s4 + $0x8] sm:$0xff]  }
 0x7a2   :  { %2488 = vmatpush3.bf16.xpose.msra.mxu0 %v1364_v55  ;;  %2503 = vmatprep.mubr.msk.bf16.mxu0 %vm2775_vm0, %v2774_v1  ;;  %v1291_v22 = vsel %vm236_vm2, %v1268_v21, 0  ;;  %v1376_v39 = vsel %vm236_vm2, %v1353_v23, 0  ;;  %v2738_v55 = vld [vmem:[%s3729_s4 + $0x50] sm:$0xff]  }
 0x7a3   :  { %2489 = vmatprep.subr.bf16.mxu0 %v2774_v1 }
 0x7a5   :  { %v1270_v40 = vpop.permute.xlu0 %1269  ;;  %v1355_v42 = vpop.permute.xlu1 %1354 }
 0x7a6   :  { %2470 = vmatpush3.bf16.xpose.msra.mxu1 %v1282_v57  ;;  %v1294_v41 = vsel %vm236_vm2, %v1270_v40, 0  ;;  %v1379_v43 = vsel %vm236_vm2, %v1355_v42, 0  ;;  %v2740_v57 = vld [vmem:[%s3729_s4 + $0x58] sm:$0xff]  }
 0x7a7   :  { %2471 = vmatprep.subr.bf16.mxu1 %v2774_v1 }
 0x7a9   :  { %v1272_v60 = vpop.permute.xlu0 %1271  ;;  %v1357_v0 = vpop.permute.xlu1 %1356 }
 0x7aa   :  { %2490 = vmatpush3.bf16.xpose.msra.mxu0 %v1367_v59  ;;  %v1297_v61 = vsel %vm236_vm2, %v1272_v60, 0  ;;  %v1382_v2 = vsel %vm236_vm2, %v1357_v0, 0  ;;  %v2742_v59 = vld [vmem:[%s3729_s4 + $0x60] sm:$0xff]  }
 0x7ab   :  { %2491 = vmatprep.subr.bf16.mxu0 %v2774_v1 }
 0x7ad   :  { %v1274_v9 = vpop.permute.xlu0 %1273  ;;  %v1359_v28 = vpop.permute.xlu1 %1358 }
 0x7ae   :  { %2472 = vmatpush3.bf16.xpose.msra.mxu1 %v1285_v6  ;;  %v1300_v3 = vsel %vm236_vm2, %v1274_v9, 0  ;;  %v1385_v29 = vsel %vm236_vm2, %v1359_v28, 0  ;;  %v2744_v6 = vld [vmem:[%s3729_s4 + $0x68] sm:$0xff]  }
 0x7af   :  { %2473 = vmatprep.subr.bf16.mxu1 %v2774_v1 }
 0x7b1   :  { %v1258_v31 = vpop.permute.xlu0 %1257  ;;  %v1343_v33 = vpop.permute.xlu1 %1342 }
 0x7b2   :  { %2492 = vmatpush3.bf16.xpose.msra.mxu0 %v1370_v10  ;;  %v2746_v10 = vld [vmem:[%s3729_s4 + $0x70] sm:$0xff]  }
 0x7b3   :  { %2493 = vmatprep.subr.bf16.mxu0 %v2774_v1 }
 0x7b6   :  { %2474 = vmatpush3.bf16.xpose.msra.mxu1 %v1288_v18 }
 0x7b7   :  { %2475 = vmatprep.subr.bf16.mxu1 %v2774_v1 }
 0x7ba   :  { %2494 = vmatpush3.bf16.xpose.msra.mxu0 %v1373_v20 }
 0x7bb   :  { %2495 = vmatprep.subr.bf16.mxu0 %v2774_v1 }
 0x7be   :  { %2476 = vmatpush3.bf16.xpose.msra.mxu1 %v1291_v22 }
 0x7bf   :  { %2477 = vmatprep.subr.bf16.mxu1 %v2774_v1 }
 0x7c2   :  { %2496 = vmatpush3.bf16.xpose.msra.mxu0 %v1376_v39 }
 0x7c3   :  { %2497 = vmatprep.subr.bf16.mxu0 %v2774_v1 }
 0x7c6   :  { %2478 = vmatpush3.bf16.xpose.msra.mxu1 %v1294_v41 }
 0x7c7   :  { %2479 = vmatprep.subr.bf16.mxu1 %v2774_v1 }
 0x7ca   :  { %2498 = vmatpush3.bf16.xpose.msra.mxu0 %v1379_v43 }
 0x7cb   :  { %2499 = vmatprep.subr.bf16.mxu0 %v2774_v1 }
 0x7ce   :  { %2480 = vmatpush3.bf16.xpose.msra.mxu1 %v1297_v61 }
 0x7cf   :  { %2481 = vmatprep.subr.bf16.mxu1 %v2774_v1 }
 0x7d2   :  { %2500 = vmatpush3.bf16.xpose.msra.mxu0 %v1382_v2 }
 0x7d3   :  { %2501 = vmatprep.subr.bf16.mxu0 %v2774_v1 }
 0x7d6   :  { %2482 = vmatpush3.bf16.xpose.msra.mxu1 %v1300_v3 }
 0x7d7   :  { %2507 = vmatprep.subr.bf16.mxu1 %v2774_v1 }
 0x7da   :  { %2502 = vmatpush3.bf16.xpose.msra.mxu0 %v1385_v29 }
 0x7db   :  { %2527 = vmatprep.subr.bf16.mxu0 %v2774_v1 }
 0x7dd   :  { %2484 = vmatmul.mubr.msk.bf16.vlgmr.msra.gmra.mrb[24].mxu1 %vm236_vm2, %v1258_v31 }
 0x7de   :  { %2523 = vmatprep.mubr.msk.bf16.mxu1 %vm2775_vm0, %v2774_v1 }
 0x7e1   :  { %2504 = vmatmul.mubr.msk.bf16.vlgmr.msra.gmra.mrb[28].mxu0 %vm236_vm2, %v1343_v33 }
 0x7e2   :  { %2543 = vmatprep.mubr.msk.bf16.mxu0 %vm2775_vm0, %v2774_v1 }
 0x870   :  { %v3513_v35 = vpop.f32.mrb[20].mxu1 }
 0x871   :  { %v2445_v37 = vpop.f32.mrb[21].mxu1 }
 0x872   :  { %v1190_v38 = vpop.f32.mrb[22].mxu1 }
 0x873   :  { %v2446_v44 = vpop.f32.mrb[23].mxu1  ;;  %v2748_v38 = vld [vmem:[%s3729_s4 + $0x78] sm:$0xff]  }
 0x874   :  { %v3515_v45 = vpop.f32.mrb[24].mxu0  ;;  %v2749_v44 = vld [vmem:[%s3729_s4 + $0x38] sm:$0xff]  }
 0x875   :  { %v2610_v46 = vpack.i.bf16 %v3515_v45, %v3513_v35  ;;  %v2465_v47 = vpop.f32.mrb[25].mxu0 }
 0x876   :  { %v1254_v48 = vpop.f32.mrb[26].mxu0 }
 0x877   :  { %v2466_v50 = vpop.f32.mrb[27].mxu0 }
 0x8b0   :  { %v1336_v4 = vpop.f32.mrb[24].mxu1 }
 0x8b1   :  { %v1427_v11 = vmul.f32 0.35355338, %v1336_v4  ;;  %v2485_v12 = vpop.f32.mrb[25].mxu1 }
 0x8b2   :  { %v1339_v13 = vpop.f32.mrb[26].mxu1 }
 0x8b3   :  { %v2486_v16 = vpop.f32.mrb[27].mxu1  ;;  %v1429_v24 = vadd.f32 %v3015_v53, %v1427_v11 }
 0x8b4   :  { %v1421_v26 = vpop.f32.mrb[28].mxu0  ;;  %v2659_v16 = vld [vmem:[%s3730_s5 + $0x40] sm:$0xff]  }
 0x8b5   :  { %v1428_v27 = vmul.f32 0.35355338, %v1421_v26  ;;  %v2505_v30 = vpop.f32.mrb[29].mxu0  ;;  %1431 = vmax.xlane.f32.xlu0 %v1429_v24 }
 0x8b6   :  { %v1424_v32 = vpop.f32.mrb[30].mxu0 }
 0x8b7   :  { %v1430_v34 = vadd.f32 %v3018_v63, %v1428_v27  ;;  %v2506_v51 = vpop.f32.mrb[31].mxu0  ;;  %v1865_v27 = vsel %vm1635_vm4, %v2659_v16, 0 }
 0x8b9   :  { %1433 = vmax.xlane.f32.xlu1 %v1430_v34 }
 0x8ca   :  { %1515 = vrot.lane.b32.xlu1 %v2734_v36, %s2778_s22 }
 0x8cb   :  { %1451 = vrot.lane.b32.xlu0 %v2735_v52, %s2778_s22 }
 0x8ce   :  { %1517 = vrot.lane.b32.xlu1 %v2736_v54, %s2778_s22  ;;  %v2661_v54 = vld [vmem:[%s3730_s5 + $0x48] sm:$0xff]  }
 0x8cf   :  { %1453 = vrot.lane.b32.xlu0 %v2737_v49, %s2778_s22  ;;  %v1868_v49 = vsel %vm1635_vm4, %v2661_v54, 0 }
 0x8d2   :  { %1519 = vrot.lane.b32.xlu1 %v2738_v55, %s2778_s22  ;;  %v2663_v55 = vld [vmem:[%s3730_s5 + $0x50] sm:$0xff]  }
 0x8d3   :  { %1455 = vrot.lane.b32.xlu0 %v2739_v56, %s2778_s22  ;;  %v1871_v56 = vsel %vm1635_vm4, %v2663_v55, 0 }
 0x8d6   :  { %1521 = vrot.lane.b32.xlu1 %v2740_v57, %s2778_s22  ;;  %v2665_v57 = vld [vmem:[%s3730_s5 + $0x58] sm:$0xff]  }
 0x8d7   :  { %1457 = vrot.lane.b32.xlu0 %v2741_v58, %s2778_s22  ;;  %v1874_v58 = vsel %vm1635_vm4, %v2665_v57, 0 }
 0x8da   :  { %1523 = vrot.lane.b32.xlu1 %v2742_v59, %s2778_s22  ;;  %v2667_v59 = vld [vmem:[%s3730_s5 + $0x60] sm:$0xff]  }
 0x8db   :  { %1459 = vrot.lane.b32.xlu0 %v2743_v5, %s2778_s22  ;;  %v1877_v5 = vsel %vm1635_vm4, %v2667_v59, 0 }
 0x8de   :  { %1525 = vrot.lane.b32.xlu1 %v2744_v6, %s2778_s22  ;;  %v2669_v6 = vld [vmem:[%s3730_s5 + $0x68] sm:$0xff]  }
 0x8df   :  { %1461 = vrot.lane.b32.xlu0 %v2745_v8, %s2778_s22  ;;  %v1880_v8 = vsel %vm1635_vm4, %v2669_v6, 0 }
 0x8e2   :  { %1527 = vrot.lane.b32.xlu1 %v2746_v10, %s2778_s22  ;;  %v2671_v10 = vld [vmem:[%s3730_s5 + $0x70] sm:$0xff]  }
 0x8e3   :  { %1463 = vrot.lane.b32.xlu0 %v2747_v17, %s2778_s22  ;;  %v1883_v17 = vsel %vm1635_vm4, %v2671_v10, 0 }
 0x942   :  { %v1432_v18 = vpop.xlane.xlu0 %1431 }
 0x943   :  { %v1435_v19 = vsub.f32 %v1429_v24, %v1432_v18 }
 0x945   :  { %v1437_v20 = vmul.f32 1.442695, %v1435_v19 }
 0x946   :  { %v1434_v21 = vpop.xlane.xlu1 %1433  ;;  %v1452_v22 = vpop.permute.xlu0 %1451 }
 0x947   :  { %2698 = vpow2.f32 %v1437_v20  ;;  %v1436_v23 = vsub.f32 %v1430_v34, %v1434_v21  ;;  %2508 = vmatpush3.bf16.msra.mxu1 %v1452_v22 }
 0x948   :  { %2509 = vmatprep.subr.bf16.mxu1 %v2774_v1 }
 0x949   :  { %v1439_v39 = vmul.f32 1.442695, %v1436_v23 }
 0x94a   :  { %v1516_v40 = vpop.permute.xlu1 %1515  ;;  %v1454_v41 = vpop.permute.xlu0 %1453 }
 0x94b   :  { %2700 = vpow2.f32 %v1439_v39  ;;  %2528 = vmatpush3.bf16.msra.mxu0 %v1516_v40  ;;  %2510 = vmatpush3.bf16.msra.mxu1 %v1454_v41  ;;  %v2658_v40 = vld [vmem:[%s3730_s5] sm:$0xff]  }
 0x94c   :  { %2529 = vmatprep.subr.bf16.mxu0 %v2774_v1  ;;  %2511 = vmatprep.subr.bf16.mxu1 %v2774_v1 }
 0x94e   :  { %v1518_v42 = vpop.permute.xlu1 %1517  ;;  %v1456_v43 = vpop.permute.xlu0 %1455 }
 0x94f   :  { %2530 = vmatpush3.bf16.msra.mxu0 %v1518_v42  ;;  %2512 = vmatpush3.bf16.msra.mxu1 %v1456_v43 }
 0x950   :  { %2531 = vmatprep.subr.bf16.mxu0 %v2774_v1  ;;  %2513 = vmatprep.subr.bf16.mxu1 %v2774_v1 }
 0x951   :  { %v2699_v60 = vpop.eup %2698 }
 0x952   :  { %1441 = vadd.xlane.f32.xlu0 %v2699_v60  ;;  %v1520_v61 = vpop.permute.xlu1 %1519  ;;  %v1458_v0 = vpop.permute.xlu0 %1457 }
 0x953   :  { %2532 = vmatpush3.bf16.msra.mxu0 %v1520_v61  ;;  %2514 = vmatpush3.bf16.msra.mxu1 %v1458_v0 }
 0x954   :  { %2533 = vmatprep.subr.bf16.mxu0 %v2774_v1  ;;  %2515 = vmatprep.subr.bf16.mxu1 %v2774_v1 }
 0x955   :  { %v2701_v2 = vpop.eup %2700 }
 0x956   :  { %1443 = vadd.xlane.f32.xlu1 %v2701_v2  ;;  %v1522_v9 = vpop.permute.xlu1 %1521  ;;  %v1460_v3 = vpop.permute.xlu0 %1459 }
 0x957   :  { %2534 = vmatpush3.bf16.msra.mxu0 %v1522_v9  ;;  %2516 = vmatpush3.bf16.msra.mxu1 %v1460_v3 }
 0x958   :  { %2535 = vmatprep.subr.bf16.mxu0 %v2774_v1  ;;  %2517 = vmatprep.subr.bf16.mxu1 %v2774_v1 }
 0x95a   :  { %v1524_v28 = vpop.permute.xlu1 %1523  ;;  %v1462_v29 = vpop.permute.xlu0 %1461 }
 0x95b   :  { %2536 = vmatpush3.bf16.msra.mxu0 %v1524_v28  ;;  %2518 = vmatpush3.bf16.msra.mxu1 %v1462_v29  ;;  %v1758_v28 = vsel %vm1635_vm4, %v2658_v40, 0  ;;  %v2662_v29 = vld [vmem:[%s3730_s5 + $0x10] sm:$0xff]  }
 0x95c   :  { %2537 = vmatprep.subr.bf16.mxu0 %v2774_v1  ;;  %2519 = vmatprep.subr.bf16.mxu1 %v2774_v1 }
 0x95e   :  { %v1526_v31 = vpop.permute.xlu1 %1525  ;;  %v1464_v33 = vpop.permute.xlu0 %1463 }
 0x95f   :  { %2538 = vmatpush3.bf16.msra.mxu0 %v1526_v31  ;;  %2520 = vmatpush3.bf16.msra.mxu1 %v1464_v33  ;;  %v1764_v31 = vsel %vm1635_vm4, %v2662_v29, 0  ;;  %v2664_v33 = vld [vmem:[%s3730_s5 + $0x18] sm:$0xff]  }
 0x960   :  { %2539 = vmatprep.subr.bf16.mxu0 %v2774_v1  ;;  %2521 = vmatprep.subr.bf16.mxu1 %v2774_v1 }
 0x962   :  { %v1528_v37 = vpop.permute.xlu1 %1527 }
 0x963   :  { %2540 = vmatpush3.bf16.msra.mxu0 %v1528_v37  ;;  %v1767_v37 = vsel %vm1635_vm4, %v2664_v33, 0 }
 0x964   :  { %2541 = vmatprep.subr.bf16.mxu0 %v2774_v1 }
 0x967   :  { %1529 = vrot.lane.b32.xlu1 %v2748_v38, %s2778_s22  ;;  %v2666_v38 = vld [vmem:[%s3730_s5 + $0x20] sm:$0xff]  }
 0x968   :  { %1465 = vrot.lane.b32.xlu0 %v2749_v44, %s2778_s22  ;;  %v1770_v44 = vsel %vm1635_vm4, %v2666_v38, 0 }
 0x96b   :  { %2611 = vrot.lane.b32.xlu1 %v2610_v46, %s2779_s13 }
 0x96c   :  { %2606 = vrot.lane.b32.xlu0 %v2605_v15, %s2780_s1  ;;  %v2657_v15 = vld [vmem:[%s3733_s8 + $0x8] sm:$0xff]   ;;  %s2781_s8 = smov 24  }
 0x9df   :  { %v1442_v47 = vpop.xlane.xlu0 %1441 }
 0x9e0   :  { %2702 = vrcp.f32 %v1442_v47  ;;  %v2668_v47 = vld [vmem:[%s3730_s5 + $0x28] sm:$0xff]  }
 0x9e3   :  { %v1444_v48 = vpop.xlane.xlu1 %1443  ;;  %v1466_v50 = vpop.permute.xlu0 %1465 }
 0x9e4   :  { %2704 = vrcp.f32 %v1444_v48  ;;  %2522 = vmatpush3.bf16.msra.mxu1 %v1466_v50  ;;  %v1773_v48 = vsel %vm1635_vm4, %v2668_v47, 0  ;;  %v2670_v50 = vld [vmem:[%s3730_s5 + $0x30] sm:$0xff]  }
 0x9e5   :  { %2547 = vmatprep.subr.bf16.mxu1 %v2774_v1 }
 0x9e7   :  { %v1530_v4 = vpop.permute.xlu1 %1529  ;;  %v2607_v18 = vpop.permute.xlu0 %2606 }
 0x9e8   :  { %2542 = vmatpush3.bf16.msra.mxu0 %v1530_v4  ;;  %v2609_v20 = vunpack.i.h.bf16 %v2607_v18  ;;  %v2608_v21 = vunpack.i.l.bf16 %v2607_v18  ;;  %v1776_v4 = vsel %vm1635_vm4, %v2670_v50, 0 }
 0x9e9   :  { %2575 = vmatprep.subr.bf16.mxu0 %v2774_v1 }
 0x9ea   :  { %v2703_v35 = vpop.eup %2702  ;;  %v1604_v41 = vsel %vm236_vm2, %v3209_v25, %v2609_v20  ;;  %v1603_v42 = vsel %vm236_vm2, %v3207_v62, %v2608_v21  ;;  %v2660_v62 = vld [vmem:[%s3730_s5 + $0x8] sm:$0xff]  }
 0x9eb   :  { %v1447_v45 = vmul.f32 %v2703_v35, %v2699_v60  ;;  %v2612_v19 = vpop.permute.xlu1 %2611  ;;  %v1761_v25 = vsel %vm1635_vm4, %v2660_v62, 0  ;;  %v2672_v35 = vld [vmem:[%s3730_s5 + $0x38] sm:$0xff]  }
 0x9ec   :  { %v2614_v22 = vunpack.i.h.bf16 %v2612_v19  ;;  %v2613_v23 = vunpack.i.l.bf16 %v2612_v19 }
 0x9ed   :  { %v1449_v46 = vpack.c.bf16 %v1447_v45, %v1447_v45  ;;  %v1779_v45 = vsel %vm1635_vm4, %v2672_v35, 0 }
 0x9ee   :  { %v2705_v11 = vpop.eup %2704  ;;  %v1606_v61 = vsel %vm1605_vm5, %v1603_v42, %v2613_v23  ;;  %v1607_v0 = vsel %vm1605_vm5, %v1604_v41, %v2614_v22 }
 0x9ef   :  { %2524 = vmatmul.mubr.bf16.vlgmr.msra.gmra.mrb[28].mxu1 %v1449_v46  ;;  %v1448_v12 = vmul.f32 %v2705_v11, %v2701_v2  ;;  %v2673_v46 = vld [vmem:[%s3730_s5 + $0x78] sm:$0xff]   ;;  %s2782_s5 = smov [#allocation2]  }
 0x9f0   :  { %2551 = vmatprep.mubr.msk.bf16.mxu1 %vm2775_vm0, %v2774_v1  ;;  %2548 = vmatpush3.bf16.msra.mxu1 %v2656_v14  ;;  %v1886_v11 = vsel %vm1635_vm4, %v2673_v46, 0 }
 0x9f1   :  { %v1450_v7 = vpack.c.bf16 %v1448_v12, %v1448_v12  ;;  %2549 = vmatprep.subr.bf16.mxu1 %v2774_v1  ;;  %v2018_v12 = vld [vmem:[%s3734_s9] ss:$0 sm:$0xff]  ;;  %s1961_s9 = sshll.u32 %s2782_s5, 4  ;;  %s1962_s9 = int_to_ptr.vmem [resolvable:$true] %s1961_s9 }
 0x9f2   :  { %s2750_s21 = scalar_lea.vmem %s1962_s9, 256  ;;  %p2755_p1 = scmp.lt.s32.totalorder %s1962_s9, %s1962_s9 }
 0x9f3   :  { %2544 = vmatmul.mubr.bf16.vlgmr.msra.gmra.mrb[32].mxu0 %v1450_v7  ;;  %p2751_p0 = scmp.ne.s32.totalorder %s1962_s9, %s2750_s21  ;;  %p2756_p2 = scmp.lt.s32.totalorder %s2750_s21, %s2750_s21 }
 0x9f4   :  { %2591 = vmatprep.mubr.msk.bf16.mxu0 %vm2775_vm0, %v2774_v1  ;;  %2550 = vmatpush3.bf16.msra.mxu1 %v2657_v15 }
 0x9f5   :  { %2555 = vmatprep.subr.bf16.mxu1 %v2774_v1  ;;  %2576 = vmatpush3.bf16.xpose.msra.mxu0 %v1865_v27  ;;  %p2757_p3 = por %p2756_p2, %p2755_p1 }
 0x9f6   :  { %2577 = vmatprep.subr.bf16.mxu0 %v2774_v1 }
 0x9f7   :  { %p2758_p4 = pnand %p2757_p3, %p2751_p0 }
 0x9fd   :  { %2578 = vmatpush3.bf16.xpose.msra.mxu0 %v1868_v49 }
 0x9fe   :  { %2579 = vmatprep.subr.bf16.mxu0 %v2774_v1 }
 0xa05   :  { %2580 = vmatpush3.bf16.xpose.msra.mxu0 %v1871_v56 }
 0xa06   :  { %2581 = vmatprep.subr.bf16.mxu0 %v2774_v1 }
 0xa0d   :  { %2582 = vmatpush3.bf16.xpose.msra.mxu0 %v1874_v58 }
 0xa0e   :  { %2583 = vmatprep.subr.bf16.mxu0 %v2774_v1 }
 0xa15   :  { %2584 = vmatpush3.bf16.xpose.msra.mxu0 %v1877_v5 }
 0xa16   :  { %2585 = vmatprep.subr.bf16.mxu0 %v2774_v1 }
 0xa1d   :  { %2586 = vmatpush3.bf16.xpose.msra.mxu0 %v1880_v8 }
 0xa1e   :  { %2587 = vmatprep.subr.bf16.mxu0 %v2774_v1 }
 0xa25   :  { %2588 = vmatpush3.bf16.xpose.msra.mxu0 %v1883_v17 }
 0xa26   :  { %2589 = vmatprep.subr.bf16.mxu0 %v2774_v1 }
 0xa2d   :  { %2590 = vmatpush3.bf16.xpose.msra.mxu0 %v1886_v11 }
 0xac2   :  { %v1509_v13 = vpop.f32.mrb[28].mxu1 }
 0xac3   :  { %v2525_v24 = vpop.f32.mrb[29].mxu1 }
 0xac4   :  { %v1512_v26 = vpop.f32.mrb[30].mxu1 }
 0xac5   :  { %v2526_v30 = vpop.f32.mrb[31].mxu1 }
 0xac6   :  { %v1573_v32 = vpop.f32.mrb[32].mxu0 }
 0xac7   :  { %v2615_v34 = vpack.i.bf16 %v1573_v32, %v1509_v13  ;;  %v2545_v51 = vpop.f32.mrb[33].mxu0 }
 0xac8   :  { %v1576_v36 = vpop.f32.mrb[34].mxu0 }
 0xac9   :  { %v2546_v52 = vpop.f32.mrb[35].mxu0  ;;  %2616 = vrot.lane.b32.xlu0 %v2615_v34, %s2781_s8 }
 0xb3b   :  { %v2617_v39 = vpop.permute.xlu0 %2616 }
 0xb3c   :  { %v2619_v43 = vunpack.i.h.bf16 %v2617_v39  ;;  %v2618_v60 = vunpack.i.l.bf16 %v2617_v39 }
 0xb3e   :  { %v1610_v2 = vsel %vm1608_vm6, %v1607_v0, %v2619_v43  ;;  %v1609_v9 = vsel %vm1608_vm6, %v1606_v61, %v2618_v60 }
 0xb3f   :  { %v1611_v3 = vpack.c.bf16 %v1610_v2, %v1609_v9 }
 0xb41   :  { %2552 = vmatmul.mubr.msk.bf16.vlgmr.msra.gmra.mrb[32].mxu1 %vm1635_vm4, %v1611_v3 }
 0xb42   :  { %2556 = vmatpush3.bf16.xpose.msra.mxu1 %v1758_v28  ;;  %2571 = vmatprep.mubr.msk.bf16.mxu1 %vm2775_vm0, %v2774_v1 }
 0xb43   :  { %2557 = vmatprep.subr.bf16.mxu1 %v2774_v1 }
 0xb4a   :  { %2558 = vmatpush3.bf16.xpose.msra.mxu1 %v1761_v25 }
 0xb4b   :  { %2559 = vmatprep.subr.bf16.mxu1 %v2774_v1 }
 0xb52   :  { %2560 = vmatpush3.bf16.xpose.msra.mxu1 %v1764_v31 }
 0xb53   :  { %2561 = vmatprep.subr.bf16.mxu1 %v2774_v1 }
 0xb5a   :  { %2562 = vmatpush3.bf16.xpose.msra.mxu1 %v1767_v37 }
 0xb5b   :  { %2563 = vmatprep.subr.bf16.mxu1 %v2774_v1 }
 0xb62   :  { %2564 = vmatpush3.bf16.xpose.msra.mxu1 %v1770_v44 }
 0xb63   :  { %2565 = vmatprep.subr.bf16.mxu1 %v2774_v1 }
 0xb6a   :  { %2566 = vmatpush3.bf16.xpose.msra.mxu1 %v1773_v48 }
 0xb6b   :  { %2567 = vmatprep.subr.bf16.mxu1 %v2774_v1 }
 0xb72   :  { %2568 = vmatpush3.bf16.xpose.msra.mxu1 %v1776_v4 }
 0xb73   :  { %2569 = vmatprep.subr.bf16.mxu1 %v2774_v1 }
 0xb7a   :  { %2570 = vmatpush3.bf16.xpose.msra.mxu1 %v1779_v45 }
 0xc14   :  { %v1673_v7 = vpop.f32.mrb[32].mxu1 }
 0xc15   :  { %v1674_v1 = vadd.f32 %v2018_v12, %v1673_v7  ;;  %v2553_v14 = vpop.f32.mrb[33].mxu1 }
 0xc16   :  { %v1676_v15 = vpop.f32.mrb[34].mxu1 }
 0xc17   :  { %v1712_v13 = vpack.c.bf16 %v1674_v1, %v1674_v1  ;;  %v1677_v16 = vadd.f32 %v2018_v12, %v1676_v15  ;;  %v2554_v24 = vpop.f32.mrb[35].mxu1 }
 0xc19   :  { %v1713_v26 = vpack.c.bf16 %v1677_v16, %v1677_v16  ;;  %2572 = vmatmul.mubr.msk.bf16.vlgmr.msra.gmra.mrb[36].mxu1 %vm1635_vm4, %v1712_v13 }
 0xc1b   :  { %2592 = vmatmul.mubr.msk.bf16.vlgmr.msra.gmra.mrb[36].mxu0 %vm1635_vm4, %v1713_v26 }
 0xcec   :  { %v1815_v27 = vpop.f32.mrb[36].mxu1 }
 0xced   :  { %v1928_v30 = vmul.f32 0.17677669, %v1815_v27  ;;  %v2573_v32 = vpop.f32.mrb[37].mxu1 }
 0xcee   :  { %v1818_v34 = vpop.f32.mrb[38].mxu1  ;;  %v1922_v51 = vpop.f32.mrb[36].mxu0 }
 0xcef   :  { %2706 = vtanh.f32 %v1928_v30  ;;  %v1929_v36 = vmul.f32 0.17677669, %v1922_v51  ;;  %v2574_v52 = vpop.f32.mrb[39].mxu1  ;;  %v2593_v54 = vpop.f32.mrb[37].mxu0 }
 0xcf0   :  { %v1925_v49 = vpop.f32.mrb[38].mxu0 }
 0xcf1   :  { %2708 = vtanh.f32 %v1929_v36  ;;  %v2594_v55 = vpop.f32.mrb[39].mxu0 }
 0xcf9   :  { %v2707_v56 = vpop.eup %2706 }
 0xcfa   :  { %v1932_v57 = vmul.f32 10.0, %v2707_v56 }
 0xcfb   :  { %v2709_v58 = vpop.eup %2708 }
 0xcfc   :  { %v1933_v59 = vmul.f32 10.0, %v2709_v58  ;;  %v1934_v5 = vadd.f32 %v3015_v53, %v1932_v57 }
 0xcfe   :  { %1936 = vmax.xlane.f32.xlu1 %v1934_v5  ;;  %v1935_v6 = vadd.f32 %v3018_v63, %v1933_v59 }
 0xd00   :  { %1938 = vmax.xlane.f32.xlu0 %v1935_v6 }
 0xd8b   :  { %v1937_v8 = vpop.xlane.xlu1 %1936 }
 0xd8c   :  { %v1940_v10 = vsub.f32 %v1934_v5, %v1937_v8 }
 0xd8d   :  { %v1939_v17 = vpop.xlane.xlu0 %1938 }
 0xd8e   :  { %v1942_v18 = vmul.f32 1.442695, %v1940_v10  ;;  %v1941_v19 = vsub.f32 %v1935_v6, %v1939_v17 }
 0xd90   :  { %2710 = vpow2.f32 %v1942_v18  ;;  %v1944_v20 = vmul.f32 1.442695, %v1941_v19 }
 0xd92   :  { %2712 = vpow2.f32 %v1944_v20 }
 0xd9a   :  { %v2711_v21 = vpop.eup %2710 }
 0xd9b   :  { %1946 = vadd.xlane.f32.xlu0 %v2711_v21 }
 0xd9c   :  { %v2713_v22 = vpop.eup %2712 }
 0xd9f   :  { %1948 = vadd.xlane.f32.xlu0 %v2713_v22 }
 0xe28   :  { %v1947_v23 = vpop.xlane.xlu0 %1946 }
 0xe29   :  { %2714 = vrcp.f32 %v1947_v23 }
 0xe2c   :  { %v1949_v39 = vpop.xlane.xlu0 %1948 }
 0xe2d   :  { %2716 = vrcp.f32 %v1949_v39 }
 0xe33   :  { %v2715_v53 = vpop.eup %2714 }
 0xe34   :  { %v1951_v40 = vmul.f32 %v2715_v53, %v2711_v21 }
 0xe36   :  { %1954 = vst [vmem:[#allocation2] sm:$0xff] %v1951_v40 }
 0xe37   :  { %v2717_v63 = vpop.eup %2716 }
 0xe38   :  { %v1953_v41 = vmul.f32 %v2717_v63, %v2713_v22 }
 0xe3a   :  { %1955 = vst [vmem:[#allocation2 + $0x8] sm:$0xff] %v1953_v41 }
 0xe3b   :  { %2761 = shalt.err (!%p2758_p4)
}
 0xe3c   :  { %s2762_s25 = scalar_lea.hbm %s3735_s10, 256 }
 0xe3d   :  { %p2763_p5 = scmp.ne.s32.totalorder %s3735_s10, %s2762_s25  ;;  %p2766_p6 = scmp.lt.u32.totalorder %s2762_s25, %s3735_s10 }
 0xe3f   :  { %p2768_p7 = pnand %p2766_p6, %p2763_p5 }
 0xe41   :  { %2771 = shalt.err (!%p2768_p7)
}
 0xe42   :  { %s2783_s29 = smov 128  }
 0xe43   :  { %1967 = dma.vmem_to_hbm [thread:$0]  %s1962_s9, 256, %s3735_s10, [#allocation3], %s2783_s29, %s2783_s29, %s2780_s1  }
 0xe44   :  { %2772 = dma.done.wait [#allocation3], 256  }
 0xe45   :  { %2773 = vsyncadd [#allocation3], 4294967040 }
 0xe46   :  { %1971 = vsyncpa [#allocation3], 1 }

</bundles_post_ra>
